<compile_context>
chip_gen: v7x
topology: tpu7x:2x2x1
jax: 0.10.0
libtpu: 0.0.40
codegen_flags: <defaults>
</compile_context>

<pallas_src>
import math
import functools

import jax
import jax.numpy as jnp
from jax.experimental import pallas as pl
from jax.experimental.pallas import tpu as pltpu


def _mha_kernel(xq_ref, xk_ref, xv_ref,
                wq_ref, bq_ref, wk_ref, bk_ref, wv_ref, bv_ref,
                wo_ref, bo_ref,
                out_ref,
                *, numhead, d_Q, d_K, d_V, seq_len):
    H = numhead
    S = seq_len
    M, _ = xq_ref.shape            # M = batch_block * seq_len
    Bt = M // S
    inv_sqrt_dk = 1.0 / math.sqrt(d_K)

    # --- Packed Q/K/V projections: one bf16 MXU matmul each, f32 accumulation.
    q = jnp.dot(xq_ref[...], wq_ref[...],
                preferred_element_type=jnp.float32) + bq_ref[...]
    k = jnp.dot(xk_ref[...], wk_ref[...],
                preferred_element_type=jnp.float32) + bk_ref[...]
    v = jnp.dot(xv_ref[...], wv_ref[...],
                preferred_element_type=jnp.float32) + bv_ref[...]
    # Fold 1/sqrt(d_K) into Q: O(M*H*dQ) work instead of O(S^2) on scores.
    q = q * inv_sqrt_dk

    # --- Gather heads into one leading batch dim: (H*Bt, S, d), bf16.
    # Built from lane slices + leading-dim concatenation only (no minor-dim
    # transposes inside the kernel). The (M, F) -> (Bt, S, F) split is
    # layout-free for f32 values because S % 8 == 0.
    def to_heads(t, d):
        t3 = t.reshape(Bt, S, H * d)
        heads = [t3[:, :, h * d:(h + 1) * d] for h in range(H)]
        return jnp.concatenate(heads, axis=0).astype(jnp.bfloat16)

    qh = to_heads(q, d_Q)                      # (H*Bt, S, d_Q)
    kh = to_heads(k, d_K)                      # (H*Bt, S, d_K)
    vh = to_heads(v, d_V)                      # (H*Bt, S, d_V)

    # --- Attention, batched over (head, batch) in single einsums.
    s = jnp.einsum('bqd,bkd->bqk', qh, kh,
                   preferred_element_type=jnp.float32)        # (H*Bt, S, S) f32
    m = jnp.max(s, axis=-1, keepdims=True)
    p = jnp.exp(s - m)                                         # f32 softmax math
    l = jnp.sum(p, axis=-1, keepdims=True)

    ctx = jnp.einsum('bqk,bkd->bqd', p.astype(jnp.bfloat16), vh,
                     preferred_element_type=jnp.float32)       # (H*Bt, S, d_V) f32
    ctx = ctx * pl.reciprocal(l)    # exact (approx=False): no extra softmax error

    # --- Merge heads back to the feature axis (PyTorch transpose(1,2).view)
    # and run ONE fused output projection with contraction K = H*d_V.
    ctx4 = ctx.reshape(H, Bt, S, d_V)                          # leading split: free
    ctx_cat = jnp.concatenate([ctx4[h] for h in range(H)], axis=-1)  # (Bt, S, H*d_V)
    ctx2 = ctx_cat.reshape(M, H * d_V).astype(jnp.bfloat16)
    y = jnp.dot(ctx2, wo_ref[...],
                preferred_element_type=jnp.float32) + bo_ref[...]

    out_ref[...] = y.astype(out_ref.dtype)


def multi_head_attention(x_Q, x_K, x_V, params, *,
                         numhead, d_Q, d_K, d_V, batch_block=None):
    B, S, D = x_Q.shape
    wq, bq, wk, bk, wv, bv, wo, bo = params

    if batch_block is None:
        # Prefer >= 2 grid steps (DMA/compute overlap; on v7x the "parallel"
        # axis is sharded across the 2 TensorCores) with sublane-aligned blocks.
        batch_block = B
        for cand in (B // 2, B // 4, B // 8):
            if cand > 0 and B % cand == 0 and (cand * S) % 8 == 0:
                batch_block = cand
                break
    Bt = batch_block
    assert B % Bt == 0, "batch_block must divide batch"
    assert S % 8 == 0, "seq_len must be a multiple of the f32 sublane tile (8)"
    assert (Bt * S) % 8 == 0 or Bt == B, "row block must be sublane-aligned"

    M, Mt = B * S, Bt * S

    # bf16 matmul operands (MXU-native on v5e/v6e/v7x; halves HBM/VMEM traffic).
    # Biases stay f32 (added to the f32 accumulator); softmax stays f32.
    to_bf16 = lambda a: a.astype(jnp.bfloat16)
    xq2 = to_bf16(x_Q.reshape(M, D))
    xk2 = to_bf16(x_K.reshape(M, D))
    xv2 = to_bf16(x_V.reshape(M, D))
    wq_b, wk_b, wv_b, wo_b = map(to_bf16, (wq, wk, wv, wo))

    kernel = functools.partial(_mha_kernel, numhead=numhead,
                               d_Q=d_Q, d_K=d_K, d_V=d_V, seq_len=S)

    act_spec = pl.BlockSpec((Mt, D), lambda b: (b, 0))
    # Weights/biases are resident (same block every step). At these sizes the
    # extra pipeline buffer is negligible; for production d_model single-buffer
    # them (pl.Buffered(1)) or add a grid axis tiling the output-feature dim.
    full = lambda a: pl.BlockSpec(a.shape, lambda b: (0, 0))

    out2 = pl.pallas_call(
        kernel,
        out_shape=jax.ShapeDtypeStruct((M, D), x_Q.dtype),
        grid_spec=pltpu.PrefetchScalarGridSpec(
            num_scalar_prefetch=0,
            grid=(B // Bt,),
            in_specs=[
                act_spec, act_spec, act_spec,
                full(wq_b), full(bq), full(wk_b), full(bk),
                full(wv_b), full(bv), full(wo_b), full(bo),
            ],
            out_specs=pl.BlockSpec((Mt, D), lambda b: (b, 0)),
        ),
        compiler_params=pltpu.CompilerParams(
            dimension_semantics=("parallel",),
            # Explicit VMEM budget (v5e scoped default is only 16 MiB).
            vmem_limit_bytes=32 * 1024 * 1024,
        ),
    )(xq2, xk2, xv2, wq_b, bq, wk_b, bk, wv_b, bv, wo_b, bo)

    return out2.reshape(B, S, D)


def init_linear(key, in_features, out_features):
    """Deterministic init mimicking nn.Linear (uniform +-1/sqrt(fan_in)).
    Weight stored as (in, out) so the kernel can do x @ W + b."""
    kw, kb = jax.random.split(key)
    bound = 1.0 / math.sqrt(in_features)
    w = jax.random.uniform(kw, (in_features, out_features), jnp.float32, -bound, bound)
    b = jax.random.uniform(kb, (1, out_features), jnp.float32, -bound, bound)
    return w, b


def reference_mha_f32(x_Q, x_K, x_V, params, *, numhead, d_Q, d_K, d_V):
    """Pure-f32 JAX mirror of the PyTorch module (eval mode)."""
    wq, bq, wk, bk, wv, bv, wo, bo = params
    B, S, _ = x_Q.shape
    Q = (x_Q @ wq + bq).reshape(B, S, numhead, d_Q).transpose(0, 2, 1, 3)
    K = (x_K @ wk + bk).reshape(B, S, numhead, d_K).transpose(0, 2, 1, 3)
    V = (x_V @ wv + bv).reshape(B, S, numhead, d_V).transpose(0, 2, 1, 3)
    s = jnp.einsum("bhqd,bhkd->bhqk", Q, K) / math.sqrt(d_K)
    p = jax.nn.softmax(s, axis=-1)
    ctx = jnp.einsum("bhqk,bhkd->bhqd", p, V)
    ctx = ctx.transpose(0, 2, 1, 3).reshape(B, S, numhead * d_V)
    return ctx @ wo + bo


def reference_mha_bf16(x_Q, x_K, x_V, params, *, numhead, d_Q, d_K, d_V):
    """Reference with the SAME mixed-precision policy as the kernel (bf16 MXU
    operands, f32 accumulation/softmax) so the kernel structure can be checked
    with a tight tolerance."""
    wq, bq, wk, bk, wv, bv, wo, bo = params
    B, S, D = x_Q.shape
    bf, f32 = jnp.bfloat16, jnp.float32
    q = jnp.einsum("bsd,df->bsf", x_Q.astype(bf), wq.astype(bf),
                   preferred_element_type=f32) + bq
    k = jnp.einsum("bsd,df->bsf", x_K.astype(bf), wk.astype(bf),
                   preferred_element_type=f32) + bk
    v = jnp.einsum("bsd,df->bsf", x_V.astype(bf), wv.astype(bf),
                   preferred_element_type=f32) + bv
    q = q * (1.0 / math.sqrt(d_K))
    q = q.reshape(B, S, numhead, d_Q).transpose(0, 2, 1, 3).astype(bf)
    k = k.reshape(B, S, numhead, d_K).transpose(0, 2, 1, 3).astype(bf)
    v = v.reshape(B, S, numhead, d_V).transpose(0, 2, 1, 3).astype(bf)
    s = jnp.einsum("bhqd,bhkd->bhqk", q, k, preferred_element_type=f32)
    m = jnp.max(s, axis=-1, keepdims=True)
    p = jnp.exp(s - m)
    l = jnp.sum(p, axis=-1, keepdims=True)
    ctx = jnp.einsum("bhqk,bhkd->bhqd", p.astype(bf), v,
                     preferred_element_type=f32) * (1.0 / l)
    ctx = ctx.transpose(0, 2, 1, 3).reshape(B, S, numhead * d_V).astype(bf)
    return jnp.einsum("bsf,fd->bsd", ctx, wo.astype(bf),
                      preferred_element_type=f32) + bo


if __name__ == "__main__":
    # Small, module-consistent shapes; batch=16 so the default batch_block=8
    # gives grid=(2,) parallel steps with (8,128)-aligned row blocks.
    batch, seq_len, d_model = 16, 8, 32
    d_Q = d_K = d_V = 8
    numhead = 4

    root = jax.random.PRNGKey(0)
    kq, kk, kv, ko, kxq, kxk, kxv = jax.random.split(root, 7)

    wq, bq = init_linear(kq, d_model, d_Q * numhead)
    wk, bk = init_linear(kk, d_model, d_K * numhead)
    wv, bv = init_linear(kv, d_model, d_V * numhead)
    wo, bo = init_linear(ko, numhead * d_V, d_model)
    params = (wq, bq, wk, bk, wv, bv, wo, bo)

    x_Q = jax.random.normal(kxq, (batch, seq_len, d_model), jnp.float32)
    x_K = jax.random.normal(kxk, (batch, seq_len, d_model), jnp.float32)
    x_V = jax.random.normal(kxv, (batch, seq_len, d_model), jnp.float32)

    out = multi_head_attention(x_Q, x_K, x_V, params,
                               numhead=numhead, d_Q=d_Q, d_K=d_K, d_V=d_V)
    out = jax.block_until_ready(out)
    assert out.shape == (batch, seq_len, d_model)

    # Tight structural check vs a reference with identical precision policy.
    ref_bf = reference_mha_bf16(x_Q, x_K, x_V, params,
                                numhead=numhead, d_Q=d_Q, d_K=d_K, d_V=d_V)
    assert jnp.allclose(out, ref_bf, atol=2e-3, rtol=2e-3), \
        "mismatch vs mixed-precision JAX reference"

    # Sanity check vs the pure-f32 PyTorch-equivalent math (tolerance reflects
    # bf16 operand rounding only; accumulation is f32).
    ref_f32 = reference_mha_f32(x_Q, x_K, x_V, params,
                                numhead=numhead, d_Q=d_Q, d_K=d_K, d_V=d_V)
    assert jnp.allclose(out, ref_f32, atol=2e-2, rtol=2e-2), \
        "mismatch vs f32 JAX reference"

    print("KERNEL_OK")
</pallas_src>

<mosaic_0001>
module attributes {stable_mosaic.version = 11 : i64} {
  func.func @_mha_kernel(%arg0: i32, %arg1: memref<64x32xbf16, #tpu.memory_space<vmem>>, %arg2: memref<64x32xbf16, #tpu.memory_space<vmem>>, %arg3: memref<64x32xbf16, #tpu.memory_space<vmem>>, %arg4: memref<32x32xbf16, #tpu.memory_space<vmem>>, %arg5: memref<1x32xf32, #tpu.memory_space<vmem>>, %arg6: memref<32x32xbf16, #tpu.memory_space<vmem>>, %arg7: memref<1x32xf32, #tpu.memory_space<vmem>>, %arg8: memref<32x32xbf16, #tpu.memory_space<vmem>>, %arg9: memref<1x32xf32, #tpu.memory_space<vmem>>, %arg10: memref<32x32xbf16, #tpu.memory_space<vmem>>, %arg11: memref<1x32xf32, #tpu.memory_space<vmem>>, %arg12: memref<64x32xf32, #tpu.memory_space<vmem>>) attributes {dimension_semantics = [#tpu.dimension_semantics<parallel>], iteration_bounds = array<i64: 2>, scalar_prefetch = 0 : i64, scratch_operands = 0 : i64, tpu.core_type = #tpu.core_type<tc>, window_params = [{transform_indices = @transform_0, window_bounds = array<i64: 64, 32>}, {transform_indices = @transform_1, window_bounds = array<i64: 64, 32>}, {transform_indices = @transform_2, window_bounds = array<i64: 64, 32>}, {pipeline_mode = #tpu.pipeline_mode<synchronous>, transform_indices = @transform_3, window_bounds = array<i64: 32, 32>}, {pipeline_mode = #tpu.pipeline_mode<synchronous>, transform_indices = @transform_4, window_bounds = array<i64: 1, 32>}, {pipeline_mode = #tpu.pipeline_mode<synchronous>, transform_indices = @transform_5, window_bounds = array<i64: 32, 32>}, {pipeline_mode = #tpu.pipeline_mode<synchronous>, transform_indices = @transform_6, window_bounds = array<i64: 1, 32>}, {pipeline_mode = #tpu.pipeline_mode<synchronous>, transform_indices = @transform_7, window_bounds = array<i64: 32, 32>}, {pipeline_mode = #tpu.pipeline_mode<synchronous>, transform_indices = @transform_8, window_bounds = array<i64: 1, 32>}, {pipeline_mode = #tpu.pipeline_mode<synchronous>, transform_indices = @transform_9, window_bounds = array<i64: 32, 32>}, {pipeline_mode = #tpu.pipeline_mode<synchronous>, transform_indices = @transform_10, window_bounds = array<i64: 1, 32>}, {transform_indices = @transform_11, window_bounds = array<i64: 64, 32>}]} {
    %c0 = arith.constant 0 : index
    %c0_0 = arith.constant 0 : index
    %0 = vector.load %arg1[%c0, %c0_0] : memref<64x32xbf16, #tpu.memory_space<vmem>>, vector<64x32xbf16>
    %c0_1 = arith.constant 0 : index
    %c0_2 = arith.constant 0 : index
    %1 = vector.load %arg4[%c0_1, %c0_2] : memref<32x32xbf16, #tpu.memory_space<vmem>>, vector<32x32xbf16>
    %cst = arith.constant dense<0.000000e+00> : vector<64x32xf32>
    %2 = tpu.matmul %0, %1, %cst {dimension_numbers = #tpu.dot_dimension_numbers<[1], [0], [0], [1], [0, 0, 1, 1], [], []>} : vector<64x32xbf16>, vector<32x32xbf16>, vector<64x32xf32> -> vector<64x32xf32>
    %c0_3 = arith.constant 0 : index
    %c0_4 = arith.constant 0 : index
    %3 = vector.load %arg5[%c0_3, %c0_4] : memref<1x32xf32, #tpu.memory_space<vmem>>, vector<1x32xf32>
    %4 = vector.broadcast %3 : vector<1x32xf32> to vector<64x32xf32>
    %5 = arith.addf %2, %4 : vector<64x32xf32>
    %c0_5 = arith.constant 0 : index
    %c0_6 = arith.constant 0 : index
    %6 = vector.load %arg2[%c0_5, %c0_6] : memref<64x32xbf16, #tpu.memory_space<vmem>>, vector<64x32xbf16>
    %c0_7 = arith.constant 0 : index
    %c0_8 = arith.constant 0 : index
    %7 = vector.load %arg6[%c0_7, %c0_8] : memref<32x32xbf16, #tpu.memory_space<vmem>>, vector<32x32xbf16>
    %cst_9 = arith.constant dense<0.000000e+00> : vector<64x32xf32>
    %8 = tpu.matmul %6, %7, %cst_9 {dimension_numbers = #tpu.dot_dimension_numbers<[1], [0], [0], [1], [0, 0, 1, 1], [], []>} : vector<64x32xbf16>, vector<32x32xbf16>, vector<64x32xf32> -> vector<64x32xf32>
    %c0_10 = arith.constant 0 : index
    %c0_11 = arith.constant 0 : index
    %9 = vector.load %arg7[%c0_10, %c0_11] : memref<1x32xf32, #tpu.memory_space<vmem>>, vector<1x32xf32>
    %10 = vector.broadcast %9 : vector<1x32xf32> to vector<64x32xf32>
    %11 = arith.addf %8, %10 : vector<64x32xf32>
    %c0_12 = arith.constant 0 : index
    %c0_13 = arith.constant 0 : index
    %12 = vector.load %arg3[%c0_12, %c0_13] : memref<64x32xbf16, #tpu.memory_space<vmem>>, vector<64x32xbf16>
    %c0_14 = arith.constant 0 : index
    %c0_15 = arith.constant 0 : index
    %13 = vector.load %arg8[%c0_14, %c0_15] : memref<32x32xbf16, #tpu.memory_space<vmem>>, vector<32x32xbf16>
    %cst_16 = arith.constant dense<0.000000e+00> : vector<64x32xf32>
    %14 = tpu.matmul %12, %13, %cst_16 {dimension_numbers = #tpu.dot_dimension_numbers<[1], [0], [0], [1], [0, 0, 1, 1], [], []>} : vector<64x32xbf16>, vector<32x32xbf16>, vector<64x32xf32> -> vector<64x32xf32>
    %c0_17 = arith.constant 0 : index
    %c0_18 = arith.constant 0 : index
    %15 = vector.load %arg9[%c0_17, %c0_18] : memref<1x32xf32, #tpu.memory_space<vmem>>, vector<1x32xf32>
    %16 = vector.broadcast %15 : vector<1x32xf32> to vector<64x32xf32>
    %17 = arith.addf %14, %16 : vector<64x32xf32>
    %cst_19 = arith.constant 0.353553385 : f32
    %18 = vector.broadcast %cst_19 : f32 to vector<64x32xf32>
    %19 = arith.mulf %5, %18 : vector<64x32xf32>
    %20 = vector.shape_cast %19 : vector<64x32xf32> to vector<8x8x32xf32>
    %21 = vector.extract_strided_slice %20 {offsets = [0, 0, 0], sizes = [8, 8, 8], strides = [1, 1, 1]} : vector<8x8x32xf32> to vector<8x8x8xf32>
    %22 = vector.extract_strided_slice %20 {offsets = [0, 0, 8], sizes = [8, 8, 8], strides = [1, 1, 1]} : vector<8x8x32xf32> to vector<8x8x8xf32>
    %23 = vector.extract_strided_slice %20 {offsets = [0, 0, 16], sizes = [8, 8, 8], strides = [1, 1, 1]} : vector<8x8x32xf32> to vector<8x8x8xf32>
    %24 = vector.extract_strided_slice %20 {offsets = [0, 0, 24], sizes = [8, 8, 8], strides = [1, 1, 1]} : vector<8x8x32xf32> to vector<8x8x8xf32>
    %25 = tpu.concatenate %21, %22, %23, %24 in 0 : vector<8x8x8xf32>, vector<8x8x8xf32>, vector<8x8x8xf32>, vector<8x8x8xf32> -> vector<32x8x8xf32>
    %26 = arith.truncf %25 : vector<32x8x8xf32> to vector<32x8x8xbf16>
    %27 = vector.shape_cast %11 : vector<64x32xf32> to vector<8x8x32xf32>
    %28 = vector.extract_strided_slice %27 {offsets = [0, 0, 0], sizes = [8, 8, 8], strides = [1, 1, 1]} : vector<8x8x32xf32> to vector<8x8x8xf32>
    %29 = vector.extract_strided_slice %27 {offsets = [0, 0, 8], sizes = [8, 8, 8], strides = [1, 1, 1]} : vector<8x8x32xf32> to vector<8x8x8xf32>
    %30 = vector.extract_strided_slice %27 {offsets = [0, 0, 16], sizes = [8, 8, 8], strides = [1, 1, 1]} : vector<8x8x32xf32> to vector<8x8x8xf32>
    %31 = vector.extract_strided_slice %27 {offsets = [0, 0, 24], sizes = [8, 8, 8], strides = [1, 1, 1]} : vector<8x8x32xf32> to vector<8x8x8xf32>
    %32 = tpu.concatenate %28, %29, %30, %31 in 0 : vector<8x8x8xf32>, vector<8x8x8xf32>, vector<8x8x8xf32>, vector<8x8x8xf32> -> vector<32x8x8xf32>
    %33 = arith.truncf %32 : vector<32x8x8xf32> to vector<32x8x8xbf16>
    %34 = vector.shape_cast %17 : vector<64x32xf32> to vector<8x8x32xf32>
    %35 = vector.extract_strided_slice %34 {offsets = [0, 0, 0], sizes = [8, 8, 8], strides = [1, 1, 1]} : vector<8x8x32xf32> to vector<8x8x8xf32>
    %36 = vector.extract_strided_slice %34 {offsets = [0, 0, 8], sizes = [8, 8, 8], strides = [1, 1, 1]} : vector<8x8x32xf32> to vector<8x8x8xf32>
    %37 = vector.extract_strided_slice %34 {offsets = [0, 0, 16], sizes = [8, 8, 8], strides = [1, 1, 1]} : vector<8x8x32xf32> to vector<8x8x8xf32>
    %38 = vector.extract_strided_slice %34 {offsets = [0, 0, 24], sizes = [8, 8, 8], strides = [1, 1, 1]} : vector<8x8x32xf32> to vector<8x8x8xf32>
    %39 = tpu.concatenate %35, %36, %37, %38 in 0 : vector<8x8x8xf32>, vector<8x8x8xf32>, vector<8x8x8xf32>, vector<8x8x8xf32> -> vector<32x8x8xf32>
    %40 = arith.truncf %39 : vector<32x8x8xf32> to vector<32x8x8xbf16>
    "tpu.trace_start"() <{level = 10 : i32, message = "bqd,bkd->bqk"}> : () -> ()
    %cst_20 = arith.constant dense<0.000000e+00> : vector<32x8x8xf32>
    %41 = tpu.matmul %26, %33, %cst_20 {dimension_numbers = #tpu.dot_dimension_numbers<[2], [2], [1], [1], [0, 0, 0, 1, 1, 1], [0], [0]>} : vector<32x8x8xbf16>, vector<32x8x8xbf16>, vector<32x8x8xf32> -> vector<32x8x8xf32>
    "tpu.trace_stop"() : () -> ()
    %cst_21 = arith.constant dense<0xFF800000> : vector<32x8xf32>
    %42 = vector.multi_reduction <maximumf>, %41, %cst_21 [2] : vector<32x8x8xf32> to vector<32x8xf32>
    %43 = vector.shape_cast %42 : vector<32x8xf32> to vector<32x8x1xf32>
    %44 = vector.broadcast %43 : vector<32x8x1xf32> to vector<32x8x8xf32>
    %45 = arith.subf %41, %44 : vector<32x8x8xf32>
    %46 = math.exp %45 : vector<32x8x8xf32>
    %cst_22 = arith.constant dense<0.000000e+00> : vector<32x8xf32>
    %47 = vector.multi_reduction <add>, %46, %cst_22 [2] : vector<32x8x8xf32> to vector<32x8xf32>
    %48 = vector.shape_cast %47 : vector<32x8xf32> to vector<32x8x1xf32>
    %49 = arith.truncf %46 : vector<32x8x8xf32> to vector<32x8x8xbf16>
    "tpu.trace_start"() <{level = 10 : i32, message = "bqk,bkd->bqd"}> : () -> ()
    %cst_23 = arith.constant dense<0.000000e+00> : vector<32x8x8xf32>
    %50 = tpu.matmul %49, %40, %cst_23 {dimension_numbers = #tpu.dot_dimension_numbers<[2], [1], [1], [2], [0, 0, 0, 1, 1, 2], [0], [0]>} : vector<32x8x8xbf16>, vector<32x8x8xbf16>, vector<32x8x8xf32> -> vector<32x8x8xf32>
    "tpu.trace_stop"() : () -> ()
    %51 = tpu.reciprocal %48 : vector<32x8x1xf32> -> vector<32x8x1xf32>
    %52 = vector.broadcast %51 : vector<32x8x1xf32> to vector<32x8x8xf32>
    %53 = arith.mulf %50, %52 : vector<32x8x8xf32>
    %54 = vector.shape_cast %53 : vector<32x8x8xf32> to vector<4x8x8x8xf32>
    %55 = vector.extract_strided_slice %54 {offsets = [0, 0, 0, 0], sizes = [1, 8, 8, 8], strides = [1, 1, 1, 1]} : vector<4x8x8x8xf32> to vector<1x8x8x8xf32>
    %56 = vector.shape_cast %55 : vector<1x8x8x8xf32> to vector<8x8x8xf32>
    %57 = vector.extract_strided_slice %54 {offsets = [1, 0, 0, 0], sizes = [1, 8, 8, 8], strides = [1, 1, 1, 1]} : vector<4x8x8x8xf32> to vector<1x8x8x8xf32>
    %58 = vector.shape_cast %57 : vector<1x8x8x8xf32> to vector<8x8x8xf32>
    %59 = vector.extract_strided_slice %54 {offsets = [2, 0, 0, 0], sizes = [1, 8, 8, 8], strides = [1, 1, 1, 1]} : vector<4x8x8x8xf32> to vector<1x8x8x8xf32>
    %60 = vector.shape_cast %59 : vector<1x8x8x8xf32> to vector<8x8x8xf32>
    %61 = vector.extract_strided_slice %54 {offsets = [3, 0, 0, 0], sizes = [1, 8, 8, 8], strides = [1, 1, 1, 1]} : vector<4x8x8x8xf32> to vector<1x8x8x8xf32>
    %62 = vector.shape_cast %61 : vector<1x8x8x8xf32> to vector<8x8x8xf32>
    %63 = tpu.concatenate %56, %58, %60, %62 in 2 : vector<8x8x8xf32>, vector<8x8x8xf32>, vector<8x8x8xf32>, vector<8x8x8xf32> -> vector<8x8x32xf32>
    %64 = vector.shape_cast %63 : vector<8x8x32xf32> to vector<64x32xf32>
    %65 = arith.truncf %64 : vector<64x32xf32> to vector<64x32xbf16>
    %c0_24 = arith.constant 0 : index
    %c0_25 = arith.constant 0 : index
    %66 = vector.load %arg10[%c0_24, %c0_25] : memref<32x32xbf16, #tpu.memory_space<vmem>>, vector<32x32xbf16>
    %cst_26 = arith.constant dense<0.000000e+00> : vector<64x32xf32>
    %67 = tpu.matmul %65, %66, %cst_26 {dimension_numbers = #tpu.dot_dimension_numbers<[1], [0], [0], [1], [0, 0, 1, 1], [], []>} : vector<64x32xbf16>, vector<32x32xbf16>, vector<64x32xf32> -> vector<64x32xf32>
    %c0_27 = arith.constant 0 : index
    %c0_28 = arith.constant 0 : index
    %68 = vector.load %arg11[%c0_27, %c0_28] : memref<1x32xf32, #tpu.memory_space<vmem>>, vector<1x32xf32>
    %69 = vector.broadcast %68 : vector<1x32xf32> to vector<64x32xf32>
    %70 = arith.addf %67, %69 : vector<64x32xf32>
    %c0_29 = arith.constant 0 : index
    %c0_30 = arith.constant 0 : index
    %71 = vector.load %arg12[%c0_29, %c0_30] : memref<64x32xf32, #tpu.memory_space<vmem>>, vector<64x32xf32>
    tpu.vector_store %arg12[%c0_29, %c0_30], %70 {strides = array<i32>} : memref<64x32xf32, #tpu.memory_space<vmem>>, vector<64x32xf32>,
    return
  }
  func.func @transform_0(%arg0: i32) -> (i32, i32) {
    %c0_i32 = arith.constant 0 : i32
    %c0_i32_0 = arith.constant 0 : i32
    return %arg0, %c0_i32 : i32, i32
  }
  func.func @transform_1(%arg0: i32) -> (i32, i32) {
    %c0_i32 = arith.constant 0 : i32
    %c0_i32_0 = arith.constant 0 : i32
    return %arg0, %c0_i32 : i32, i32
  }
  func.func @transform_2(%arg0: i32) -> (i32, i32) {
    %c0_i32 = arith.constant 0 : i32
    %c0_i32_0 = arith.constant 0 : i32
    return %arg0, %c0_i32 : i32, i32
  }
  func.func @transform_3(%arg0: i32) -> (i32, i32) {
    %c0_i32 = arith.constant 0 : i32
    %c0_i32_0 = arith.constant 0 : i32
    %c0_i32_1 = arith.constant 0 : i32
    return %c0_i32, %c0_i32_0 : i32, i32
  }
  func.func @transform_4(%arg0: i32) -> (i32, i32) {
    %c0_i32 = arith.constant 0 : i32
    %c0_i32_0 = arith.constant 0 : i32
    %c0_i32_1 = arith.constant 0 : i32
    return %c0_i32, %c0_i32_0 : i32, i32
  }
  func.func @transform_5(%arg0: i32) -> (i32, i32) {
    %c0_i32 = arith.constant 0 : i32
    %c0_i32_0 = arith.constant 0 : i32
    %c0_i32_1 = arith.constant 0 : i32
    return %c0_i32, %c0_i32_0 : i32, i32
  }
  func.func @transform_6(%arg0: i32) -> (i32, i32) {
    %c0_i32 = arith.constant 0 : i32
    %c0_i32_0 = arith.constant 0 : i32
    %c0_i32_1 = arith.constant 0 : i32
    return %c0_i32, %c0_i32_0 : i32, i32
  }
  func.func @transform_7(%arg0: i32) -> (i32, i32) {
    %c0_i32 = arith.constant 0 : i32
    %c0_i32_0 = arith.constant 0 : i32
    %c0_i32_1 = arith.constant 0 : i32
    return %c0_i32, %c0_i32_0 : i32, i32
  }
  func.func @transform_8(%arg0: i32) -> (i32, i32) {
    %c0_i32 = arith.constant 0 : i32
    %c0_i32_0 = arith.constant 0 : i32
    %c0_i32_1 = arith.constant 0 : i32
    return %c0_i32, %c0_i32_0 : i32, i32
  }
  func.func @transform_9(%arg0: i32) -> (i32, i32) {
    %c0_i32 = arith.constant 0 : i32
    %c0_i32_0 = arith.constant 0 : i32
    %c0_i32_1 = arith.constant 0 : i32
    return %c0_i32, %c0_i32_0 : i32, i32
  }
  func.func @transform_10(%arg0: i32) -> (i32, i32) {
    %c0_i32 = arith.constant 0 : i32
    %c0_i32_0 = arith.constant 0 : i32
    %c0_i32_1 = arith.constant 0 : i32
    return %c0_i32, %c0_i32_0 : i32, i32
  }
  func.func @transform_11(%arg0: i32) -> (i32, i32) {
    %c0_i32 = arith.constant 0 : i32
    %c0_i32_0 = arith.constant 0 : i32
    return %arg0, %c0_i32 : i32, i32
  }
}

</mosaic_0001>

<bundles_post_ra>
// kernel: tpu_custom_call.1
= control target key start
LH: loop header
LB: loop body
LE: loop exit
PB: predicated region body
PF: predicated region fallthrough
CT: control target
= control target key end

     0   :  { %s5995_s17 = smov 0   ;;  %s6933_s0 = inlined_call_operand.vmem [shape: bf16[128,32], index: 0, kind: input, shape index: {}]   ;;  %s6934_s1 = inlined_call_operand.vmem [shape: bf16[128,32], index: 1, kind: input, shape index: {}]   ;;  %s6935_s2 = inlined_call_operand.vmem [shape: bf16[128,32], index: 2, kind: input, shape index: {}]   ;;  %s6936_s3 = inlined_call_operand.vmem [shape: bf16[32,32], index: 3, kind: input, shape index: {}]   ;;  %s6937_s4 = inlined_call_operand.vmem [shape: f32[1,32], index: 4, kind: input, shape index: {}]   ;;  %s6938_s5 = inlined_call_operand.vmem [shape: bf16[32,32], index: 5, kind: input, shape index: {}]   ;;  %s6939_s6 = inlined_call_operand.vmem [shape: f32[1,32], index: 6, kind: input, shape index: {}]   ;;  %s6940_s7 = inlined_call_operand.vmem [shape: bf16[32,32], index: 7, kind: input, shape index: {}]   ;;  %s6941_s8 = inlined_call_operand.vmem [shape: f32[1,32], index: 8, kind: input, shape index: {}]   ;;  %s6942_s9 = inlined_call_operand.vmem [shape: bf16[32,32], index: 9, kind: input, shape index: {}]   ;;  %s6943_s10 = inlined_call_operand.vmem [shape: f32[1,32], index: 10, kind: input, shape index: {}]   ;;  %s6944_s11 = inlined_call_operand.vmem [shape: f32[128,32], index: 11, kind: output, shape index: {}]  }
   0x1 LB: > { %s4808_s18 = sadd.s32 4294967295, %s5925_s17   ;;  %p4812_p0 = scmp.ge.s32.totalorder %s5925_s17, 1  ;;  %s5925_s17 = sphi %s5995_s17, %s21_s17  }
   0x2   : > { %p360_p1 = scmp.lt.s32.totalorder %s5925_s17, 3 }
   0x4   : > { %p361_p2 = pnand %p4812_p0, %p360_p1 }
   0x5   : > { %v5771_v0 = vld [vmem:[%s6936_s3] sm:$0xff] (!%p361_p2)   ;;  %s4813_s21 = sshll.u32 (!%p361_p2), %s4808_s18, 3  ;;  %v5772_v1 = vld [vmem:[%s6936_s3 + $0x8] sm:$0xff] (!%p361_p2)   ;;  %vm486_vm0 = vcmask (!%p361_p2), 261120   ;;  %v5927_v18 = vmov (!%p361_p2), 0.0   ;;  %vm5928_vm1 = vmmov (!%p361_p2), 0  }
   0x6   : > { %364 = sbr.rel (%p361_p2) target bundleno = 1432 (0x598), region = 64  ;;  %p411_p3 = scmp.lt.s32.totalorder (!%p361_p2), %s4813_s21, 15  ;;  %5511 = vmatprep.subr.bf16.mxu1 (!%p361_p2), %v5771_v0  ;;  %5079 = vmatprep.subr.bf16.mxu0 (!%p361_p2), %v5771_v0  ;;  %v5775_v2 = vld [vmem:[%s6938_s5] sm:$0xff] (!%p361_p2)   ;;  %v5776_v4 = vld [vmem:[%s6938_s5 + $0x8] sm:$0xff] (!%p361_p2)   ;;  %vm1164_vm2 = vcmask (!%p361_p2), 64512   ;;  %vm2960_vm3 = vcmask (!%p361_p2), 1043456  }
   0x7   : > { %5513 = vmatpush3.bf16.msra.mxu1 (!%p361_p2), %v5771_v0  ;;  %5080 = vmatpush3.bf16.msra.mxu0 (!%p361_p2), %v5771_v0  ;;  %v5783_v3 = vld [vmem:[%s6940_s7] sm:$0xff] (!%p361_p2)   ;;  %v5784_v8 = vld [vmem:[%s6940_s7 + $0x8] sm:$0xff] (!%p361_p2)   ;;  %s5929_s29 = smov (!%p361_p2), 120   ;;  %s5930_s30 = smov (!%p361_p2), 112   ;;  %vm4598_vm4 = vcmask (!%p361_p2), 130048   ;;  %vm4607_vm5 = vcmask (!%p361_p2), 195584  }
   0x8   : > { %5512 = vmatprep.subr.bf16.mxu1 (!%p361_p2), %v5772_v1  ;;  %5081 = vmatprep.subr.bf16.mxu0 (!%p361_p2), %v5772_v1  ;;  %v4821_v19 = vld [vmem:[%s6937_s4] ss:$0 sm:$0xff] (!%p361_p2)  ;;  %s5933_s16 = smov (!%p361_p2), 16   ;;  %s5934_s23 = smov (!%p361_p2), 24  }
   0x9   : > { %v4832_v28 = vld [vmem:[%s6939_s6] ss:$0 sm:$0xff] (!%p361_p2) }
   0xb   : > { %5514 = vmatpush3.bf16.msra.mxu1 (!%p361_p2), %v5772_v1  ;;  %5082 = vmatpush3.bf16.msra.mxu0 (!%p361_p2), %v5772_v1 }
   0xc   : > { %5091 = vmatprep.subr.bf16.mxu1 (!%p361_p2), %v5775_v2  ;;  %5103 = vmatprep.subr.bf16.mxu0 (!%p361_p2), %v5783_v3 }
   0xd   : > { %s6946_s21 = smov (!%p411_p3, %s4813_s21), 15 }
   0xe   : > { %s4814_s28 = sshll.u32 %s6946_s21, 2 }
   0xf   : > { %s414_s12 = scalar_lea.vmem %s6933_s0, %s4814_s28  ;;  %s6024_s15 = scalar_lea.vmem %s6934_s1, %s4814_s28 }
  0x10   : > { %v5773_v5 = vld [vmem:[%s414_s12 + $0x10] sm:$0xff]   ;;  %v5774_v6 = vld [vmem:[%s414_s12 + $0x18] sm:$0xff]   ;;  %v5777_v7 = vld [vmem:[%s6024_s15] sm:$0xff]   ;;  %s426_s24 = scalar_lea.vmem %s6935_s2, %s4814_s28 }
  0x11   : > { %5087 = vmatprep.mubr.msk.bf16.mxu1 %vm486_vm0, %v5773_v5  ;;  %v5779_v9 = vld [vmem:[%s414_s12] sm:$0xff]   ;;  %v5780_v10 = vld [vmem:[%s414_s12 + $0x8] sm:$0xff]   ;;  %v5781_v12 = vld [vmem:[%s6024_s15 + $0x10] sm:$0xff]   ;;  %s5931_s12 = smov 104  }
  0x12   : > { %5088 = vmatmul.mubr.msk.bf16.vlgmr.msra.gmra.mrb[0].mxu1 %vm486_vm0, %v5774_v6  ;;  %v5778_v11 = vld [vmem:[%s6024_s15 + $0x8] sm:$0xff]   ;;  %5083 = vmatprep.mubr.msk.bf16.mxu0 %vm486_vm0, %v5779_v9  ;;  %v5785_v13 = vld [vmem:[%s426_s24] sm:$0xff]   ;;  %v5787_v15 = vld [vmem:[%s426_s24 + $0x10] sm:$0xff]  }
  0x13   : > { %5092 = vmatpush3.bf16.msra.mxu1 %v5775_v2  ;;  %5095 = vmatprep.mubr.msk.bf16.mxu1 %vm486_vm0, %v5777_v7  ;;  %v5786_v14 = vld [vmem:[%s426_s24 + $0x8] sm:$0xff]   ;;  %v5782_v16 = vld [vmem:[%s6024_s15 + $0x18] sm:$0xff]   ;;  %s5932_s15 = smov 8  }
  0x14   : > { %5093 = vmatprep.subr.bf16.mxu1 %v5776_v4  ;;  %5084 = vmatmul.mubr.msk.bf16.vlgmr.msra.gmra.mrb[0].mxu0 %vm486_vm0, %v5780_v10  ;;  %v5788_v17 = vld [vmem:[%s426_s24 + $0x18] sm:$0xff]   ;;  %s4820_s24 = sshll.u32 %s6946_s21, 3 }
  0x15   : > { %5104 = vmatpush3.bf16.msra.mxu0 %v5783_v3  ;;  %5107 = vmatprep.mubr.msk.bf16.mxu0 %vm486_vm0, %v5785_v13 }
  0x16   : > { %5105 = vmatprep.subr.bf16.mxu0 %v5784_v8 }
  0x17   : > { %5094 = vmatpush3.bf16.msra.mxu1 %v5776_v4 }
  0x18   : > { %5115 = vmatprep.subr.bf16.mxu1 %v5927_v18 }
  0x19   : > { %5106 = vmatpush3.bf16.msra.mxu0 %v5784_v8 }
  0x1a   : > { %5096 = vmatmul.mubr.msk.bf16.vlgmr.msra.gmra.mrb[4].mxu1 %vm486_vm0, %v5778_v11  ;;  %5127 = vmatprep.subr.bf16.mxu0 %v5927_v18 }
  0x1b   : > { %5099 = vmatprep.mubr.msk.bf16.mxu1 %vm486_vm0, %v5781_v12 }
  0x1c   : > { %5108 = vmatmul.mubr.msk.bf16.vlgmr.msra.gmra.mrb[4].mxu0 %vm486_vm0, %v5786_v14 }
  0x1d   : > { %5111 = vmatprep.mubr.msk.bf16.mxu0 %vm486_vm0, %v5787_v15 }
  0x22   : > { %5100 = vmatmul.mubr.msk.bf16.gmra.mrb[8].mxu1 %vm486_vm0, %v5782_v16 }
  0x23   : > { %5117 = vmatprep.mubr.msk.bf16.mxu1 %vm5928_vm1, %v5927_v18 }
  0x24   : > { %5112 = vmatmul.mubr.msk.bf16.gmra.mrb[8].mxu0 %vm486_vm0, %v5788_v17 }
  0x25   : > { %5129 = vmatprep.mubr.msk.bf16.mxu0 %vm5928_vm1, %v5927_v18 }
  0xe5   : > { %v5089_v20 = vpop.f32.mrb[0].mxu1 }
  0xe6   : > { %v558_v21 = vadd.f32 %v5089_v20, %v4821_v19  ;;  %v549_v22 = vpop.f32.mrb[1].mxu1 }
  0xe7   : > { %v550_v23 = vadd.f32 %v4821_v19, %v549_v22  ;;  %v5090_v24 = vpop.f32.mrb[2].mxu1  ;;  %v5085_v29 = vpop.f32.mrb[0].mxu0 }
  0xe8   : > { %v561_v25 = vadd.f32 %v5090_v24, %v4821_v19  ;;  %v552_v26 = vpop.f32.mrb[3].mxu1  ;;  %v6063_v30 = vmul.f32 0.35355338, %v558_v21  ;;  %v542_v32 = vadd.f32 %v5085_v29, %v4821_v19  ;;  %v533_v33 = vpop.f32.mrb[1].mxu0 }
  0xe9   : > { %v553_v27 = vadd.f32 %v4821_v19, %v552_v26  ;;  %v6067_v34 = vmul.f32 0.35355338, %v550_v23  ;;  %v534_v36 = vadd.f32 %v4821_v19, %v533_v33  ;;  %v5086_v37 = vpop.f32.mrb[2].mxu0 }
  0xea   : > { %v6065_v31 = vmul.f32 0.35355338, %v561_v25  ;;  %v822_v38 = vmul.f32 0.35355338, %v542_v32  ;;  %v545_v39 = vadd.f32 %v5086_v37, %v4821_v19  ;;  %v536_v40 = vpop.f32.mrb[3].mxu0  ;;  %v914_v23 = vpack.c.bf16 %v6063_v30, %v6063_v30 }
  0xeb   : > { %v6069_v35 = vmul.f32 0.35355338, %v553_v27  ;;  %v820_v43 = vmul.f32 0.35355338, %v534_v36  ;;  %v537_v44 = vadd.f32 %v4821_v19, %v536_v40  ;;  %v912_v17 = vpack.c.bf16 %v6067_v34, %v6067_v34 }
  0xec   : > { %v6073_v41 = vpack.i.bf16 %v6065_v31, %v6063_v30  ;;  %v6079_v48 = vmul.f32 0.35355338, %v545_v39  ;;  %v910_v0 = vpack.c.bf16 %v822_v38, %v822_v38  ;;  %v915_v29 = vpack.c.bf16 %v6065_v31, %v6065_v31  ;;  %v4843_v31 = vld [vmem:[%s6941_s8] ss:$0 sm:$0xff] }
  0xed   : > { %v5097_v42 = vpop.f32.mrb[4].mxu1  ;;  %v6077_v45 = vpack.i.bf16 %v6069_v35, %v6067_v34  ;;  %v821_v51 = vmul.f32 0.35355338, %v537_v44  ;;  %v908_v3 = vpack.c.bf16 %v820_v43, %v820_v43  ;;  %v913_v27 = vpack.c.bf16 %v6069_v35, %v6069_v35 }
  0xee   : > { %v670_v46 = vadd.f32 %v5097_v42, %v4832_v28  ;;  %v661_v47 = vpop.f32.mrb[5].mxu1  ;;  %v6082_v55 = vpack.i.bf16 %v6079_v48, %v822_v38  ;;  %v911_v24 = vpack.c.bf16 %v6079_v48, %v6079_v48 }
  0xef   : > { %v662_v49 = vadd.f32 %v4832_v28, %v661_v47  ;;  %v5098_v50 = vpop.f32.mrb[6].mxu1  ;;  %v6084_v58 = vpack.i.bf16 %v821_v51, %v820_v43  ;;  %v909_v20 = vpack.c.bf16 %v821_v51, %v821_v51  ;;  %v5109_v30 = vpop.f32.mrb[4].mxu0 }
  0xf0   : > { %v673_v52 = vadd.f32 %v5098_v50, %v4832_v28  ;;  %v664_v53 = vpop.f32.mrb[7].mxu1  ;;  %v1022_v54 = vpack.c.bf16 %v670_v46, %v670_v46  ;;  %v6190_v32 = vadd.f32 %v5109_v30, %v4843_v31  ;;  %v789_v33 = vpop.f32.mrb[5].mxu0 }
  0xf1   : > { %v665_v56 = vadd.f32 %v4832_v28, %v664_v53  ;;  %v1020_v57 = vpack.c.bf16 %v662_v49, %v662_v49  ;;  %v6192_v34 = vadd.f32 %v4843_v31, %v789_v33  ;;  %v5110_v35 = vpop.f32.mrb[6].mxu0 }
  0xf2   : > { %v1261_v59 = vsel %vm1164_vm2, %v1022_v54, 0  ;;  %v6087_v60 = vpack.i.bf16 %v673_v52, %v670_v46  ;;  %v1023_v16 = vpack.c.bf16 %v673_v52, %v673_v52  ;;  %v6194_v36 = vadd.f32 %v5110_v35, %v4843_v31  ;;  %v792_v37 = vpop.f32.mrb[7].mxu0 }
  0xf3   : > { %5128 = vmatpush3.bf16.xpose.msra.mxu0 %v1261_v59  ;;  %v1169_v61 = vsel %vm1164_vm2, %v1020_v57, 0  ;;  %v6090_v62 = vpack.i.bf16 %v665_v56, %v662_v49  ;;  %v1021_v8 = vpack.c.bf16 %v665_v56, %v665_v56  ;;  %v6196_v38 = vadd.f32 %v4843_v31, %v792_v37 }
  0xf4   : > { %5542 = vrot.lane.b32.xlu1 %v6087_v60, %s5929_s29  ;;  %5116 = vmatpush3.bf16.xpose.msra.mxu1 %v1169_v61  ;;  %v1307_v21 = vsel %vm1164_vm2, %v1023_v16, 0 }
  0xf5   : > { %v5101_v63 = vpop.f32.mrb[8].mxu1  ;;  %5532 = vrot.lane.b32.xlu0 %v6090_v62, %s5929_s29  ;;  %5121 = vmatprep.subr.bf16.mxu1 %v5927_v18  ;;  %v1215_v14 = vsel %vm1164_vm2, %v1021_v8, 0  ;;  %v6206_v44 = vpack.i.bf16 %v6196_v38, %v6192_v34 }
  0xf6   : > { %v686_v1 = vadd.f32 %v5101_v63, %v4832_v28  ;;  %v677_v2 = vpop.f32.mrb[9].mxu1  ;;  %5139 = vmatprep.subr.bf16.mxu0 %v5927_v18 }
  0xf7   : > { %v678_v4 = vadd.f32 %v4832_v28, %v677_v2  ;;  %v5102_v5 = vpop.f32.mrb[10].mxu1  ;;  %v5113_v39 = vpop.f32.mrb[8].mxu0 }
  0xf8   : > { %v689_v6 = vadd.f32 %v5102_v5, %v4832_v28  ;;  %v680_v7 = vpop.f32.mrb[11].mxu1  ;;  %5547 = vrot.lane.b32.xlu1 %v6082_v55, %s5929_s29  ;;  %v1026_v15 = vpack.c.bf16 %v686_v1, %v686_v1  ;;  %v805_v40 = vpop.f32.mrb[9].mxu0  ;;  %v6202_v42 = vadd.f32 %v5113_v39, %v4843_v31 }
  0xf9   : > { %v681_v9 = vadd.f32 %v4832_v28, %v680_v7  ;;  %5537 = vrot.lane.b32.xlu0 %v6084_v58, %s5929_s29  ;;  %v1024_v10 = vpack.c.bf16 %v678_v4, %v678_v4  ;;  %v5114_v43 = vpop.f32.mrb[10].mxu0  ;;  %v6214_v46 = vadd.f32 %v4843_v31, %v805_v40 }
  0xfa   : > { %5130 = vmatmul.mubr.msk.bf16.vlgmr.msra.gmra.mrb[12].mxu0 %vm1164_vm2, %v910_v0  ;;  %v6103_v11 = vpack.i.bf16 %v689_v6, %v686_v1  ;;  %v1445_v19 = vsel %vm1164_vm2, %v1026_v15, 0  ;;  %v1027_v26 = vpack.c.bf16 %v689_v6, %v689_v6  ;;  %v808_v47 = vpop.f32.mrb[11].mxu0 }
  0xfb   : > { %5118 = vmatmul.mubr.msk.bf16.vlgmr.msra.gmra.mrb[12].mxu1 %vm1164_vm2, %v908_v3  ;;  %v1353_v12 = vsel %vm1164_vm2, %v1024_v10, 0  ;;  %v5551_v13 = vpack.i.bf16 %v681_v9, %v678_v4  ;;  %5141 = vmatprep.mubr.msk.bf16.mxu0 %vm5928_vm1, %v5927_v18  ;;  %v1025_v22 = vpack.c.bf16 %v681_v9, %v681_v9  ;;  %v6220_v49 = vadd.f32 %v4843_v31, %v808_v47 }
  0xfc   : > { %5140 = vmatpush3.bf16.xpose.msra.mxu0 %v1353_v12  ;;  %5557 = vrot.lane.b32.xlu1 %v6077_v45, %s5929_s29  ;;  %v1491_v28 = vsel %vm1164_vm2, %v1027_v26, 0 }
  0xfd   : > { %5122 = vmatpush3.bf16.xpose.msra.mxu1 %v1215_v14  ;;  %5552 = vrot.lane.b32.xlu0 %v5551_v13, %s5929_s29  ;;  %v1399_v25 = vsel %vm1164_vm2, %v1025_v22, 0  ;;  %v6228_v50 = vpack.i.bf16 %v6220_v49, %v6214_v46 }
  0xfe   : > { %5123 = vmatprep.mubr.msk.bf16.mxu1 %vm5928_vm1, %v5927_v18  ;;  %5133 = vmatprep.subr.bf16.mxu1 %v5927_v18 }
  0xff   : > { %5151 = vmatprep.subr.bf16.mxu0 %v5927_v18 }
 0x100   : > { %5567 = vrot.lane.b32.xlu1 %v6073_v41, %s5929_s29 }
 0x101   : > { %5562 = vrot.lane.b32.xlu0 %v6103_v11, %s5929_s29 }
 0x103   : > { %5142 = vmatmul.mubr.msk.bf16.vlgmr.msra.gmra.mrb[16].mxu0 %vm1164_vm2, %v912_v17 }
 0x104   : > { %5124 = vmatmul.mubr.msk.bf16.vlgmr.msra.gmra.mrb[16].mxu1 %vm1164_vm2, %v909_v20  ;;  %5152 = vmatpush3.bf16.xpose.msra.mxu0 %v1445_v19 }
 0x105   : > { %5577 = vrot.lane.b32.xlu1 %v6084_v58, %s5930_s30  ;;  %5134 = vmatpush3.bf16.xpose.msra.mxu1 %v1307_v21 }
 0x106   : > { %5572 = vrot.lane.b32.xlu0 %v6090_v62, %s5930_s30  ;;  %5135 = vmatprep.mubr.msk.bf16.mxu1 %vm5928_vm1, %v5927_v18 }
 0x107   : > { %5153 = vmatprep.mubr.msk.bf16.mxu0 %vm5928_vm1, %v5927_v18  ;;  %5145 = vmatprep.subr.bf16.mxu1 %v5927_v18 }
 0x108   : > { %5163 = vmatprep.subr.bf16.mxu0 %v5927_v18 }
 0x109   : > { %5587 = vrot.lane.b32.xlu1 %v6082_v55, %s5930_s30 }
 0x10a   : > { %5582 = vrot.lane.b32.xlu0 %v6087_v60, %s5930_s30 }
 0x10b   : > { %5154 = vmatmul.mubr.msk.bf16.vlgmr.msra.gmra.mrb[20].mxu0 %vm1164_vm2, %v914_v23 }
 0x10c   : > { %5136 = vmatmul.mubr.msk.bf16.vlgmr.msra.gmra.mrb[20].mxu1 %vm1164_vm2, %v911_v24  ;;  %5165 = vmatprep.mubr.msk.bf16.mxu0 %vm5928_vm1, %v5927_v18 }
 0x10d   : > { %5597 = vrot.lane.b32.xlu1 %v6077_v45, %s5930_s30  ;;  %5146 = vmatpush3.bf16.xpose.msra.mxu1 %v1399_v25 }
 0x10e   : > { %5592 = vrot.lane.b32.xlu0 %v5551_v13, %s5930_s30  ;;  %5147 = vmatprep.mubr.msk.bf16.mxu1 %vm5928_vm1, %v5927_v18 }
 0x10f   : > { %5157 = vmatprep.subr.bf16.mxu1 %v5927_v18 }
 0x111   : > { %5607 = vrot.lane.b32.xlu1 %v6073_v41, %s5930_s30 }
 0x112   : > { %5602 = vrot.lane.b32.xlu0 %v6103_v11, %s5930_s30 }
 0x114   : > { %5148 = vmatmul.mubr.msk.bf16.vlgmr.msra.gmra.mrb[24].mxu1 %vm1164_vm2, %v913_v27 }
 0x115   : > { %5617 = vrot.lane.b32.xlu1 %v6084_v58, %s5931_s12  ;;  %5158 = vmatpush3.bf16.xpose.msra.mxu1 %v1491_v28 }
 0x116   : > { %5612 = vrot.lane.b32.xlu0 %v6090_v62, %s5931_s12  ;;  %5159 = vmatprep.mubr.msk.bf16.mxu1 %vm5928_vm1, %v5927_v18 }
 0x117   : > { %5169 = vmatprep.subr.bf16.mxu1 %v5927_v18 }
 0x119   : > { %5627 = vrot.lane.b32.xlu1 %v6082_v55, %s5931_s12 }
 0x11a   : > { %5622 = vrot.lane.b32.xlu0 %v6087_v60, %s5931_s12 }
 0x11c   : > { %5160 = vmatmul.mubr.msk.bf16.vlgmr.msra.gmra.mrb[28].mxu1 %vm1164_vm2, %v915_v29 }
 0x11d   : > { %5637 = vrot.lane.b32.xlu1 %v6077_v45, %s5931_s12  ;;  %5171 = vmatprep.mubr.msk.bf16.mxu1 %vm5928_vm1, %v5927_v18  ;;  %v6208_v45 = vadd.f32 %v5114_v43, %v4843_v31 }
 0x11e   : > { %5632 = vrot.lane.b32.xlu0 %v5551_v13, %s5931_s12 }
 0x11f   : > { %v6218_v48 = vpack.i.bf16 %v6208_v45, %v6202_v42 }
 0x121   : > { %5647 = vrot.lane.b32.xlu1 %v6073_v41, %s5931_s12  ;;  %v6200_v41 = vpack.i.bf16 %v6194_v36, %v6190_v32 }
 0x122   : > { %5642 = vrot.lane.b32.xlu0 %v6103_v11, %s5931_s12 }
 0x125   : > { %5652 = vrot.lane.b32.xlu1 %v6206_v44, %s5929_s29 }
 0x126   : > { %5657 = vrot.lane.b32.xlu0 %v6200_v41, %s5929_s29 }
 0x129   : > { %5662 = vrot.lane.b32.xlu1 %v6218_v48, %s5929_s29 }
 0x12a   : > { %5667 = vrot.lane.b32.xlu0 %v6206_v44, %s5930_s30 }
 0x12d   : > { %5672 = vrot.lane.b32.xlu1 %v6228_v50, %s5929_s29  ;;  %s432_s29 = scalar_lea.vmem %s6944_s11, %s4820_s24 }
 0x166   : > { %v5543_v54 = vpop.permute.xlu1 %5542 }
 0x167   : > { %v5533_v51 = vpop.permute.xlu0 %5532  ;;  %v5545_v58 = vunpack.i.h.bf16 %v5543_v54  ;;  %v5544_v59 = vunpack.i.l.bf16 %v5543_v54 }
 0x168   : > { %v5535_v52 = vunpack.i.h.bf16 %v5533_v51  ;;  %v5534_v53 = vunpack.i.l.bf16 %v5533_v51 }
 0x169   : > { %v1031_v0 = vpack.c.bf16 %v5545_v58, %v5545_v58  ;;  %v1030_v1 = vpack.c.bf16 %v5544_v59, %v5544_v59 }
 0x16a   : > { %v1029_v55 = vpack.c.bf16 %v5535_v52, %v5535_v52  ;;  %v1028_v56 = vpack.c.bf16 %v5534_v53, %v5534_v53  ;;  %v5548_v9 = vpop.permute.xlu1 %5547 }
 0x16b   : > { %v5538_v57 = vpop.permute.xlu0 %5537  ;;  %v1629_v7 = vsel %vm1164_vm2, %v1030_v1, 0  ;;  %v1675_v8 = vsel %vm1164_vm2, %v1031_v0, 0  ;;  %v5550_v10 = vunpack.i.h.bf16 %v5548_v9  ;;  %v5549_v11 = vunpack.i.l.bf16 %v5548_v9 }
 0x16c   : > { %v1537_v60 = vsel %vm1164_vm2, %v1028_v56, 0  ;;  %v1583_v61 = vsel %vm1164_vm2, %v1029_v55, 0  ;;  %v5540_v62 = vunpack.i.h.bf16 %v5538_v57  ;;  %v5539_v63 = vunpack.i.l.bf16 %v5538_v57 }
 0x16d   : > { %5164 = vmatpush3.bf16.xpose.msra.mxu0 %v1537_v60  ;;  %5170 = vmatpush3.bf16.xpose.msra.mxu1 %v1583_v61  ;;  %v919_v14 = vpack.c.bf16 %v5550_v10, %v5550_v10  ;;  %v918_v15 = vpack.c.bf16 %v5549_v11, %v5549_v11 }
 0x16e   : > { %5175 = vmatprep.subr.bf16.mxu0 %v5927_v18  ;;  %5181 = vmatprep.subr.bf16.mxu1 %v5927_v18  ;;  %v917_v2 = vpack.c.bf16 %v5540_v62, %v5540_v62  ;;  %v916_v3 = vpack.c.bf16 %v5539_v63, %v5539_v63  ;;  %v5558_v16 = vpop.permute.xlu1 %5557 }
 0x16f   : > { %v5553_v4 = vpop.permute.xlu0 %5552  ;;  %v5560_v23 = vunpack.i.h.bf16 %v5558_v16  ;;  %v5559_v24 = vunpack.i.l.bf16 %v5558_v16 }
 0x170   : > { %v5555_v5 = vunpack.i.h.bf16 %v5553_v4  ;;  %v5554_v6 = vunpack.i.l.bf16 %v5553_v4 }
 0x171   : > { %v921_v28 = vpack.c.bf16 %v5560_v23, %v5560_v23  ;;  %v920_v29 = vpack.c.bf16 %v5559_v24, %v5559_v24 }
 0x172   : > { %v1033_v12 = vpack.c.bf16 %v5555_v5, %v5555_v5  ;;  %v1032_v13 = vpack.c.bf16 %v5554_v6, %v5554_v6  ;;  %v5568_v30 = vpop.permute.xlu1 %5567 }
 0x173   : > { %v5563_v17 = vpop.permute.xlu0 %5562  ;;  %v5570_v39 = vunpack.i.h.bf16 %v5568_v30  ;;  %v5569_v40 = vunpack.i.l.bf16 %v5568_v30 }
 0x174   : > { %5166 = vmatmul.mubr.msk.bf16.vlgmr.msra.gmra.mrb[24].mxu0 %vm1164_vm2, %v916_v3  ;;  %5172 = vmatmul.mubr.msk.bf16.vlgmr.msra.gmra.mrb[32].mxu1 %vm1164_vm2, %v917_v2  ;;  %v5565_v19 = vunpack.i.h.bf16 %v5563_v17  ;;  %v5564_v20 = vunpack.i.l.bf16 %v5563_v17  ;;  %v1721_v21 = vsel %vm1164_vm2, %v1032_v13, 0  ;;  %v1767_v22 = vsel %vm1164_vm2, %v1033_v12, 0 }
 0x175   : > { %5176 = vmatpush3.bf16.xpose.msra.mxu0 %v1629_v7  ;;  %5182 = vmatpush3.bf16.xpose.msra.mxu1 %v1675_v8  ;;  %v923_v52 = vpack.c.bf16 %v5570_v39, %v5570_v39  ;;  %v922_v53 = vpack.c.bf16 %v5569_v40, %v5569_v40 }
 0x176   : > { %5177 = vmatprep.mubr.msk.bf16.mxu0 %vm5928_vm1, %v5927_v18  ;;  %5183 = vmatprep.mubr.msk.bf16.mxu1 %vm5928_vm1, %v5927_v18  ;;  %v1035_v25 = vpack.c.bf16 %v5565_v19, %v5565_v19  ;;  %v1034_v26 = vpack.c.bf16 %v5564_v20, %v5564_v20 }
 0x177   : > { %5187 = vmatprep.subr.bf16.mxu0 %v5927_v18  ;;  %5193 = vmatprep.subr.bf16.mxu1 %v5927_v18  ;;  %v5578_v54 = vpop.permute.xlu1 %5577 }
 0x178   : > { %v5573_v27 = vpop.permute.xlu0 %5572  ;;  %v1813_v35 = vsel %vm1164_vm2, %v1034_v26, 0  ;;  %v1859_v37 = vsel %vm1164_vm2, %v1035_v25, 0  ;;  %v5580_v59 = vunpack.i.h.bf16 %v5578_v54  ;;  %v5579_v60 = vunpack.i.l.bf16 %v5578_v54 }
 0x179   : > { %v5575_v31 = vunpack.i.h.bf16 %v5573_v27  ;;  %v5574_v33 = vunpack.i.l.bf16 %v5573_v27 }
 0x17a   : > { %v925_v0 = vpack.c.bf16 %v5580_v59, %v5580_v59  ;;  %v924_v1 = vpack.c.bf16 %v5579_v60, %v5579_v60 }
 0x17b   : > { %v1037_v43 = vpack.c.bf16 %v5575_v31, %v5575_v31  ;;  %v1036_v47 = vpack.c.bf16 %v5574_v33, %v5574_v33  ;;  %v5588_v2 = vpop.permute.xlu1 %5587 }
 0x17c   : > { %5178 = vmatmul.mubr.msk.bf16.vlgmr.msra.gmra.mrb[28].mxu0 %vm1164_vm2, %v918_v15  ;;  %5184 = vmatmul.mubr.msk.bf16.vlgmr.msra.gmra.mrb[36].mxu1 %vm1164_vm2, %v919_v14  ;;  %v5583_v51 = vpop.permute.xlu0 %5582  ;;  %v5590_v7 = vunpack.i.h.bf16 %v5588_v2  ;;  %v5589_v8 = vunpack.i.l.bf16 %v5588_v2 }
 0x17d   : > { %5188 = vmatpush3.bf16.xpose.msra.mxu0 %v1721_v21  ;;  %5194 = vmatpush3.bf16.xpose.msra.mxu1 %v1767_v22  ;;  %v5585_v55 = vunpack.i.h.bf16 %v5583_v51  ;;  %v5584_v56 = vunpack.i.l.bf16 %v5583_v51  ;;  %v1905_v57 = vsel %vm1164_vm2, %v1036_v47, 0  ;;  %v1951_v58 = vsel %vm1164_vm2, %v1037_v43, 0 }
 0x17e   : > { %5189 = vmatprep.mubr.msk.bf16.mxu0 %vm5928_vm1, %v5927_v18  ;;  %5195 = vmatprep.mubr.msk.bf16.mxu1 %vm5928_vm1, %v5927_v18  ;;  %v927_v12 = vpack.c.bf16 %v5590_v7, %v5590_v7  ;;  %v926_v13 = vpack.c.bf16 %v5589_v8, %v5589_v8 }
 0x17f   : > { %5199 = vmatprep.subr.bf16.mxu0 %v5927_v18  ;;  %5205 = vmatprep.subr.bf16.mxu1 %v5927_v18  ;;  %v1039_v61 = vpack.c.bf16 %v5585_v55, %v5585_v55  ;;  %v1038_v62 = vpack.c.bf16 %v5584_v56, %v5584_v56  ;;  %v5598_v14 = vpop.permute.xlu1 %5597 }
 0x180   : > { %v5593_v63 = vpop.permute.xlu0 %5592  ;;  %v5600_v20 = vunpack.i.h.bf16 %v5598_v14  ;;  %v5599_v21 = vunpack.i.l.bf16 %v5598_v14 }
 0x181   : > { %v5595_v3 = vunpack.i.h.bf16 %v5593_v63  ;;  %v5594_v4 = vunpack.i.l.bf16 %v5593_v63  ;;  %v1997_v5 = vsel %vm1164_vm2, %v1038_v62, 0  ;;  %v2043_v6 = vsel %vm1164_vm2, %v1039_v61, 0 }
 0x182   : > { %v929_v25 = vpack.c.bf16 %v5600_v20, %v5600_v20  ;;  %v928_v26 = vpack.c.bf16 %v5599_v21, %v5599_v21 }
 0x183   : > { %v1041_v9 = vpack.c.bf16 %v5595_v3, %v5595_v3  ;;  %v1040_v10 = vpack.c.bf16 %v5594_v4, %v5594_v4  ;;  %v5608_v27 = vpop.permute.xlu1 %5607 }
 0x184   : > { %5190 = vmatmul.mubr.msk.bf16.vlgmr.msra.gmra.mrb[32].mxu0 %vm1164_vm2, %v920_v29  ;;  %5196 = vmatmul.mubr.msk.bf16.vlgmr.msra.gmra.mrb[40].mxu1 %vm1164_vm2, %v921_v28  ;;  %v5603_v11 = vpop.permute.xlu0 %5602  ;;  %v5610_v33 = vunpack.i.h.bf16 %v5608_v27 }
 0x185   : > { %5200 = vmatpush3.bf16.xpose.msra.mxu0 %v1813_v35  ;;  %5206 = vmatpush3.bf16.xpose.msra.mxu1 %v1859_v37  ;;  %v5605_v15 = vunpack.i.h.bf16 %v5603_v11  ;;  %v5604_v16 = vunpack.i.l.bf16 %v5603_v11  ;;  %v2089_v17 = vsel %vm1164_vm2, %v1040_v10, 0  ;;  %v2135_v19 = vsel %vm1164_vm2, %v1041_v9, 0 }
 0x186   : > { %5201 = vmatprep.mubr.msk.bf16.mxu0 %vm5928_vm1, %v5927_v18  ;;  %5207 = vmatprep.mubr.msk.bf16.mxu1 %vm5928_vm1, %v5927_v18  ;;  %v5609_v35 = vunpack.i.l.bf16 %v5608_v27  ;;  %v931_v43 = vpack.c.bf16 %v5610_v33, %v5610_v33 }
 0x187   : > { %5211 = vmatprep.subr.bf16.mxu0 %v5927_v18  ;;  %5217 = vmatprep.subr.bf16.mxu1 %v5927_v18  ;;  %v1043_v22 = vpack.c.bf16 %v5605_v15, %v5605_v15  ;;  %v1042_v23 = vpack.c.bf16 %v5604_v16, %v5604_v16  ;;  %v5618_v51 = vpop.permute.xlu1 %5617 }
 0x188   : > { %v5613_v24 = vpop.permute.xlu0 %5612  ;;  %v930_v47 = vpack.c.bf16 %v5609_v35, %v5609_v35  ;;  %v5620_v56 = vunpack.i.h.bf16 %v5618_v51 }
 0x189   : > { %v5615_v28 = vunpack.i.h.bf16 %v5613_v24  ;;  %v5614_v29 = vunpack.i.l.bf16 %v5613_v24  ;;  %v2181_v30 = vsel %vm1164_vm2, %v1042_v23, 0  ;;  %v2227_v31 = vsel %vm1164_vm2, %v1043_v22, 0 }
 0x18a   : > { %v933_v61 = vpack.c.bf16 %v5620_v56, %v5620_v56 }
 0x18b   : > { %v1045_v37 = vpack.c.bf16 %v5615_v28, %v5615_v28  ;;  %v1044_v39 = vpack.c.bf16 %v5614_v29, %v5614_v29  ;;  %v5628_v63 = vpop.permute.xlu1 %5627  ;;  %v1132_v28 = vpack.c.bf16 %v6192_v34, %v6192_v34  ;;  %v1133_v29 = vpack.c.bf16 %v6196_v38, %v6196_v38 }
 0x18c   : > { %5202 = vmatmul.mubr.msk.bf16.vlgmr.msra.gmra.mrb[36].mxu0 %vm1164_vm2, %v922_v53  ;;  %5208 = vmatmul.mubr.msk.bf16.vlgmr.msra.gmra.mrb[44].mxu1 %vm1164_vm2, %v923_v52  ;;  %v5623_v40 = vpop.permute.xlu0 %5622  ;;  %v5630_v4 = vunpack.i.h.bf16 %v5628_v63 }
 0x18d   : > { %5212 = vmatpush3.bf16.xpose.msra.mxu0 %v1905_v57  ;;  %5218 = vmatpush3.bf16.xpose.msra.mxu1 %v1951_v58  ;;  %v5625_v52 = vunpack.i.h.bf16 %v5623_v40  ;;  %v5624_v53 = vunpack.i.l.bf16 %v5623_v40  ;;  %v2273_v54 = vsel %vm1164_vm2, %v1044_v39, 0  ;;  %v2319_v55 = vsel %vm1164_vm2, %v1045_v37, 0 }
 0x18e   : > { %5213 = vmatprep.mubr.msk.bf16.mxu0 %vm5928_vm1, %v5927_v18  ;;  %5219 = vmatprep.mubr.msk.bf16.mxu1 %vm5928_vm1, %v5927_v18  ;;  %v5619_v57 = vunpack.i.l.bf16 %v5618_v51  ;;  %v935_v9 = vpack.c.bf16 %v5630_v4, %v5630_v4  ;;  %v2962_v33 = vsel %vm2960_vm3, %v1132_v28, 0  ;;  %v3008_v35 = vsel %vm2960_vm3, %v1133_v29, 0 }
 0x18f   : > { %5223 = vmatprep.subr.bf16.mxu0 %v5927_v18  ;;  %5229 = vmatprep.subr.bf16.mxu1 %v5927_v18  ;;  %v1047_v58 = vpack.c.bf16 %v5625_v52, %v5625_v52  ;;  %v1046_v59 = vpack.c.bf16 %v5624_v53, %v5624_v53  ;;  %v5638_v11 = vpop.permute.xlu1 %5637 }
 0x190   : > { %v5633_v60 = vpop.permute.xlu0 %5632  ;;  %v932_v62 = vpack.c.bf16 %v5619_v57, %v5619_v57  ;;  %v5640_v16 = vunpack.i.h.bf16 %v5638_v11 }
 0x191   : > { %v2365_v2 = vsel %vm1164_vm2, %v1046_v59, 0  ;;  %v2411_v3 = vsel %vm1164_vm2, %v1047_v58, 0 }
 0x192   : > { %v937_v21 = vpack.c.bf16 %v5640_v16, %v5640_v16 }
 0x193   : > { %v5648_v23 = vpop.permute.xlu1 %5647 }
 0x194   : > { %5214 = vmatmul.mubr.msk.bf16.vlgmr.msra.gmra.mrb[40].mxu0 %vm1164_vm2, %v924_v1  ;;  %5220 = vmatmul.mubr.msk.bf16.vlgmr.msra.gmra.mrb[48].mxu1 %vm1164_vm2, %v925_v0  ;;  %v5635_v0 = vunpack.i.h.bf16 %v5633_v60  ;;  %v5634_v1 = vunpack.i.l.bf16 %v5633_v60  ;;  %v5643_v8 = vpop.permute.xlu0 %5642  ;;  %v5649_v27 = vunpack.i.l.bf16 %v5648_v23 }
 0x195   : > { %5224 = vmatpush3.bf16.xpose.msra.mxu0 %v1997_v5  ;;  %5230 = vmatpush3.bf16.xpose.msra.mxu1 %v2043_v6  ;;  %v5629_v5 = vunpack.i.l.bf16 %v5628_v63 }
 0x196   : > { %5225 = vmatprep.mubr.msk.bf16.mxu0 %vm5928_vm1, %v5927_v18  ;;  %5231 = vmatprep.mubr.msk.bf16.mxu1 %vm5928_vm1, %v5927_v18  ;;  %v1049_v6 = vpack.c.bf16 %v5635_v0, %v5635_v0  ;;  %v1048_v7 = vpack.c.bf16 %v5634_v1, %v5634_v1 }
 0x197   : > { %5235 = vmatprep.subr.bf16.mxu0 %v5927_v18  ;;  %5241 = vmatprep.subr.bf16.mxu1 %v5927_v18  ;;  %v934_v10 = vpack.c.bf16 %v5629_v5, %v5629_v5 }
 0x198   : > { %v2457_v14 = vsel %vm1164_vm2, %v1048_v7, 0  ;;  %v2503_v15 = vsel %vm1164_vm2, %v1049_v6, 0 }
 0x19c   : > { %5226 = vmatmul.mubr.msk.bf16.vlgmr.msra.gmra.mrb[44].mxu0 %vm1164_vm2, %v926_v13  ;;  %5232 = vmatmul.mubr.msk.bf16.vlgmr.msra.gmra.mrb[52].mxu1 %vm1164_vm2, %v927_v12  ;;  %v5645_v12 = vunpack.i.h.bf16 %v5643_v8  ;;  %v5644_v13 = vunpack.i.l.bf16 %v5643_v8 }
 0x19d   : > { %5236 = vmatpush3.bf16.xpose.msra.mxu0 %v2089_v17  ;;  %5242 = vmatpush3.bf16.xpose.msra.mxu1 %v2135_v19  ;;  %v5639_v17 = vunpack.i.l.bf16 %v5638_v11 }
 0x19e   : > { %5237 = vmatprep.mubr.msk.bf16.mxu0 %vm5928_vm1, %v5927_v18  ;;  %5243 = vmatprep.mubr.msk.bf16.mxu1 %vm5928_vm1, %v5927_v18  ;;  %v1051_v19 = vpack.c.bf16 %v5645_v12, %v5645_v12  ;;  %v1050_v20 = vpack.c.bf16 %v5644_v13, %v5644_v13 }
 0x19f   : > { %5247 = vmatprep.subr.bf16.mxu0 %v5927_v18  ;;  %5253 = vmatprep.subr.bf16.mxu1 %v5927_v18  ;;  %v936_v22 = vpack.c.bf16 %v5639_v17, %v5639_v17 }
 0x1a0   : > { %v2549_v24 = vsel %vm1164_vm2, %v1050_v20, 0 }
 0x1a4   : > { %5238 = vmatmul.mubr.msk.bf16.vlgmr.msra.gmra.mrb[48].mxu0 %vm1164_vm2, %v928_v26  ;;  %5244 = vmatmul.mubr.msk.bf16.vlgmr.msra.gmra.mrb[56].mxu1 %vm1164_vm2, %v929_v25  ;;  %v2595_v25 = vsel %vm1164_vm2, %v1051_v19, 0  ;;  %v5650_v26 = vunpack.i.h.bf16 %v5648_v23 }
 0x1a5   : > { %5248 = vmatpush3.bf16.xpose.msra.mxu0 %v2181_v30  ;;  %5254 = vmatpush3.bf16.xpose.msra.mxu1 %v2227_v31  ;;  %v938_v31 = vpack.c.bf16 %v5649_v27, %v5649_v27 }
 0x1a6   : > { %5249 = vmatprep.mubr.msk.bf16.mxu0 %vm5928_vm1, %v5927_v18  ;;  %5255 = vmatprep.mubr.msk.bf16.mxu1 %vm5928_vm1, %v5927_v18  ;;  %v939_v30 = vpack.c.bf16 %v5650_v26, %v5650_v26 }
 0x1a7   : > { %5259 = vmatprep.subr.bf16.mxu0 %v5927_v18  ;;  %5265 = vmatprep.subr.bf16.mxu1 %v5927_v18 }
 0x1ac   : > { %5250 = vmatmul.mubr.msk.bf16.vlgmr.msra.gmra.mrb[52].mxu0 %vm1164_vm2, %v930_v47  ;;  %5256 = vmatmul.mubr.msk.bf16.vlgmr.msra.gmra.mrb[60].mxu1 %vm1164_vm2, %v931_v43 }
 0x1ad   : > { %5260 = vmatpush3.bf16.xpose.msra.mxu0 %v2273_v54  ;;  %5266 = vmatpush3.bf16.xpose.msra.mxu1 %v2319_v55 }
 0x1ae   : > { %5261 = vmatprep.mubr.msk.bf16.mxu0 %vm5928_vm1, %v5927_v18  ;;  %5267 = vmatprep.mubr.msk.bf16.mxu1 %vm5928_vm1, %v5927_v18 }
 0x1af   : > { %5271 = vmatprep.subr.bf16.mxu0 %v5927_v18  ;;  %5277 = vmatprep.subr.bf16.mxu1 %v5927_v18 }
 0x1b4   : > { %5262 = vmatmul.mubr.msk.bf16.vlgmr.msra.gmra.mrb[56].mxu0 %vm1164_vm2, %v932_v62  ;;  %5268 = vmatmul.mubr.msk.bf16.vlgmr.msra.gmra.mrb[64].mxu1 %vm1164_vm2, %v933_v61 }
 0x1b5   : > { %5272 = vmatpush3.bf16.xpose.msra.mxu0 %v2365_v2  ;;  %5278 = vmatpush3.bf16.xpose.msra.mxu1 %v2411_v3 }
 0x1b6   : > { %5273 = vmatprep.mubr.msk.bf16.mxu0 %vm5928_vm1, %v5927_v18  ;;  %5279 = vmatprep.mubr.msk.bf16.mxu1 %vm5928_vm1, %v5927_v18 }
 0x1b7   : > { %5283 = vmatprep.subr.bf16.mxu0 %v5927_v18  ;;  %5289 = vmatprep.subr.bf16.mxu1 %v5927_v18 }
 0x1bc   : > { %5274 = vmatmul.mubr.msk.bf16.vlgmr.msra.gmra.mrb[60].mxu0 %vm1164_vm2, %v934_v10  ;;  %5280 = vmatmul.mubr.msk.bf16.vlgmr.msra.gmra.mrb[68].mxu1 %vm1164_vm2, %v935_v9 }
 0x1bd   : > { %5284 = vmatpush3.bf16.xpose.msra.mxu0 %v2457_v14  ;;  %5290 = vmatpush3.bf16.xpose.msra.mxu1 %v2503_v15 }
 0x1be   : > { %5285 = vmatprep.mubr.msk.bf16.mxu0 %vm5928_vm1, %v5927_v18  ;;  %5291 = vmatprep.mubr.msk.bf16.mxu1 %vm5928_vm1, %v5927_v18 }
 0x1bf   : > { %5295 = vmatprep.subr.bf16.mxu0 %v5927_v18  ;;  %5301 = vmatprep.subr.bf16.mxu1 %v5927_v18 }
 0x1c4   : > { %5286 = vmatmul.mubr.msk.bf16.vlgmr.msra.gmra.mrb[64].mxu0 %vm1164_vm2, %v936_v22  ;;  %5292 = vmatmul.mubr.msk.bf16.vlgmr.msra.gmra.mrb[72].mxu1 %vm1164_vm2, %v937_v21 }
 0x1c5   : > { %5296 = vmatpush3.bf16.xpose.msra.mxu0 %v2549_v24  ;;  %5302 = vmatpush3.bf16.xpose.msra.mxu1 %v2595_v25 }
 0x1c6   : > { %5297 = vmatprep.mubr.msk.bf16.mxu0 %vm5928_vm1, %v5927_v18  ;;  %5303 = vmatprep.mubr.msk.bf16.mxu1 %vm5928_vm1, %v5927_v18 }
 0x1c7   : > { %5307 = vmatprep.subr.bf16.mxu0 %v5927_v18  ;;  %5313 = vmatprep.subr.bf16.mxu1 %v5927_v18 }
 0x1cc   : > { %5298 = vmatmul.mubr.msk.bf16.vlgmr.msra.gmra.mrb[68].mxu0 %vm1164_vm2, %v938_v31  ;;  %5304 = vmatmul.mubr.msk.bf16.vlgmr.msra.gmra.mrb[76].mxu1 %vm1164_vm2, %v939_v30  ;;  %v6400_v31 = vpop.permute.xlu0 %5657 }
 0x1cd   : > { %v6354_v37 = vpop.f32.mrb[12].mxu0  ;;  %5308 = vmatpush3.bf16.msra.mxu0 %v2962_v33  ;;  %5314 = vmatpush3.bf16.msra.mxu1 %v3008_v35  ;;  %v6402_v33 = vpop.permute.xlu1 %5652 }
 0x1ce   : > { %v6356_v34 = vpop.f32.mrb[12].mxu1  ;;  %v5131_v38 = vpop.f32.mrb[13].mxu0  ;;  %v2643_v39 = vsel %vm1164_vm2, %v6354_v37, -inf  ;;  %5309 = vmatprep.mubr.msk.bf16.mxu0 %vm5928_vm1, %v5927_v18  ;;  %5319 = vmatprep.subr.bf16.mxu0 %v5927_v18 }
 0x1cf   : > { %v1300_v40 = vpop.f32.mrb[14].mxu0  ;;  %2644 = vmax.xlane.f32.xlu0 %v2643_v39  ;;  %v5119_v43 = vpop.f32.mrb[13].mxu1  ;;  %5315 = vmatprep.mubr.msk.bf16.mxu1 %vm5928_vm1, %v5927_v18  ;;  %v2637_v53 = vsel %vm1164_vm2, %v6356_v34, -inf }
 0x1d0   : > { %v1208_v47 = vpop.f32.mrb[14].mxu1  ;;  %v5132_v51 = vpop.f32.mrb[15].mxu0  ;;  %5325 = vmatprep.subr.bf16.mxu1 %v5927_v18 }
 0x1d1   : > { %v5120_v52 = vpop.f32.mrb[15].mxu1 }
 0x1d3   : > { %2638 = vmax.xlane.f32.xlu0 %v2637_v53 }
 0x1d6   : > { %v6368_v54 = vpop.f32.mrb[16].mxu0 }
 0x1d7   : > { %v6370_v55 = vpop.f32.mrb[16].mxu1  ;;  %v5143_v56 = vpop.f32.mrb[17].mxu0  ;;  %v2649_v63 = vsel %vm1164_vm2, %v6368_v54, -inf }
 0x1d8   : > { %v5125_v57 = vpop.f32.mrb[17].mxu1  ;;  %v1392_v58 = vpop.f32.mrb[18].mxu0  ;;  %v2640_v59 = vsel %vm1164_vm2, %v6370_v55, -inf }
 0x1d9   : > { %2641 = vmax.xlane.f32.xlu1 %v2640_v59  ;;  %v1254_v60 = vpop.f32.mrb[18].mxu1  ;;  %v5144_v61 = vpop.f32.mrb[19].mxu0 }
 0x1da   : > { %v5126_v62 = vpop.f32.mrb[19].mxu1  ;;  %v6410_v56 = vpop.permute.xlu0 %5667 }
 0x1db   : > { %v6412_v57 = vpop.permute.xlu1 %5662 }
 0x1dd   : > { %2650 = vmax.xlane.f32.xlu1 %v2649_v63 }
 0x1de   : > { %v6376_v0 = vpop.f32.mrb[20].mxu0 }
 0x1df   : > { %v6378_v1 = vpop.f32.mrb[20].mxu1  ;;  %v5155_v2 = vpop.f32.mrb[21].mxu0  ;;  %v2655_v3 = vsel %vm1164_vm2, %v6376_v0, -inf }
 0x1e0   : > { %v5137_v4 = vpop.f32.mrb[21].mxu1  ;;  %v1484_v5 = vpop.f32.mrb[22].mxu0  ;;  %v2646_v6 = vsel %vm1164_vm2, %v6378_v1, -inf }
 0x1e1   : > { %2656 = vmax.xlane.f32.xlu1 %v2655_v3  ;;  %2647 = vmax.xlane.f32.xlu0 %v2646_v6  ;;  %v1346_v7 = vpop.f32.mrb[22].mxu1  ;;  %v5156_v8 = vpop.f32.mrb[23].mxu0 }
 0x1e2   : > { %v5138_v9 = vpop.f32.mrb[23].mxu1  ;;  %v6420_v5 = vpop.permute.xlu1 %5672 }
 0x1e7   : > { %v6384_v10 = vpop.f32.mrb[24].mxu1 }
 0x1e8   : > { %v5149_v11 = vpop.f32.mrb[25].mxu1  ;;  %v2652_v12 = vsel %vm1164_vm2, %v6384_v10, -inf }
 0x1e9   : > { %2653 = vmax.xlane.f32.xlu0 %v2652_v12  ;;  %v1438_v13 = vpop.f32.mrb[26].mxu1 }
 0x1ea   : > { %v5150_v14 = vpop.f32.mrb[27].mxu1 }
 0x1ef   : > { %v6388_v15 = vpop.f32.mrb[28].mxu1 }
 0x1f0   : > { %v5161_v16 = vpop.f32.mrb[29].mxu1  ;;  %v2658_v17 = vsel %vm1164_vm2, %v6388_v15, -inf }
 0x1f1   : > { %2659 = vmax.xlane.f32.xlu0 %v2658_v17  ;;  %v1530_v19 = vpop.f32.mrb[30].mxu1 }
 0x1f2   : > { %v5162_v20 = vpop.f32.mrb[31].mxu1 }
 0x247   : > { %v6392_v21 = vpop.f32.mrb[24].mxu0  ;;  %v6394_v22 = vpop.f32.mrb[32].mxu1 }
 0x248   : > { %v5167_v23 = vpop.f32.mrb[25].mxu0  ;;  %v5173_v24 = vpop.f32.mrb[33].mxu1  ;;  %v2661_v25 = vsel %vm1164_vm2, %v6392_v21, -inf  ;;  %v2664_v26 = vsel %vm1164_vm2, %v6394_v22, -inf }
 0x249   : > { %v1576_v27 = vpop.f32.mrb[26].mxu0  ;;  %2662 = vmax.xlane.f32.xlu1 %v2661_v25  ;;  %2665 = vmax.xlane.f32.xlu0 %v2664_v26  ;;  %v1622_v28 = vpop.f32.mrb[34].mxu1 }
 0x24a   : > { %v5168_v29 = vpop.f32.mrb[27].mxu0  ;;  %v5174_v30 = vpop.f32.mrb[35].mxu1 }
 0x24f   : > { %v6404_v35 = vpop.f32.mrb[28].mxu0  ;;  %v6406_v38 = vpop.f32.mrb[36].mxu1 }
 0x250   : > { %v5179_v39 = vpop.f32.mrb[29].mxu0  ;;  %v5185_v40 = vpop.f32.mrb[37].mxu1  ;;  %v2670_v43 = vsel %vm1164_vm2, %v6406_v38, -inf }
 0x251   : > { %v1668_v47 = vpop.f32.mrb[30].mxu0  ;;  %2671 = vmax.xlane.f32.xlu0 %v2670_v43  ;;  %v1714_v51 = vpop.f32.mrb[38].mxu1 }
 0x252   : > { %v5180_v52 = vpop.f32.mrb[31].mxu0  ;;  %v5186_v53 = vpop.f32.mrb[39].mxu1 }
 0x253   : > { %v1134_v52 = vpack.c.bf16 %v6190_v32, %v6190_v32 }
 0x255   : > { %v3054_v32 = vsel %vm2960_vm3, %v1134_v52, 0 }
 0x257   : > { %v6414_v58 = vpop.f32.mrb[32].mxu0  ;;  %v6416_v59 = vpop.f32.mrb[40].mxu1 }
 0x258   : > { %v5191_v60 = vpop.f32.mrb[33].mxu0  ;;  %v5197_v61 = vpop.f32.mrb[41].mxu1 }
 0x259   : > { %v1760_v62 = vpop.f32.mrb[34].mxu0  ;;  %v1806_v63 = vpop.f32.mrb[42].mxu1 }
 0x25a   : > { %v5192_v2 = vpop.f32.mrb[35].mxu0  ;;  %5677 = vrot.lane.b32.xlu1 %v6200_v41, %s5930_s30  ;;  %v5198_v3 = vpop.f32.mrb[43].mxu1 }
 0x25c   : > { %v2645_v4 = vpop.xlane.xlu0 %2644 }
 0x25d   : > { %v2735_v14 = vsub.f32 %v6354_v37, %v2645_v4 }
 0x25f   : > { %v6422_v6 = vpop.f32.mrb[36].mxu0  ;;  %v6424_v7 = vpop.f32.mrb[44].mxu1  ;;  %v2769_v23 = vmul.f32 1.442695, %v2735_v14  ;;  %v1135_v14 = vpack.c.bf16 %v6194_v36, %v6194_v36 }
 0x260   : > { %v5203_v8 = vpop.f32.mrb[37].mxu0  ;;  %v2639_v9 = vpop.xlane.xlu0 %2638 }
 0x261   : > { %v2733_v11 = vsub.f32 %v6356_v34, %v2639_v9  ;;  %v5209_v12 = vpop.f32.mrb[45].mxu1  ;;  %v1852_v13 = vpop.f32.mrb[38].mxu0  ;;  %v3100_v36 = vsel %vm2960_vm3, %v1135_v14, 0 }
 0x262   : > { %v1898_v16 = vpop.f32.mrb[46].mxu1  ;;  %v5204_v17 = vpop.f32.mrb[39].mxu0 }
 0x263   : > { %v2765_v19 = vmul.f32 1.442695, %v2733_v11  ;;  %v5210_v20 = vpop.f32.mrb[47].mxu1 }
 0x264   : > { %v1136_v20 = vpack.c.bf16 %v6214_v46, %v6214_v46 }
 0x265   : > { %5791 = vpow2.f32 %v2765_v19 }
 0x266   : > { %v2642_v24 = vpop.xlane.xlu1 %2641  ;;  %5793 = vpow2.f32 %v2769_v23 }
 0x267   : > { %v2734_v25 = vsub.f32 %v6370_v55, %v2642_v24  ;;  %v6429_v26 = vpop.f32.mrb[40].mxu0  ;;  %5682 = vrot.lane.b32.xlu0 %v6228_v50, %s5930_s30  ;;  %v6433_v27 = vpop.f32.mrb[48].mxu1 }
 0x268   : > { %v5215_v34 = vpop.f32.mrb[41].mxu0  ;;  %v5221_v28 = vpop.f32.mrb[49].mxu1 }
 0x269   : > { %v2767_v29 = vmul.f32 1.442695, %v2734_v25  ;;  %v1944_v37 = vpop.f32.mrb[42].mxu0  ;;  %v1990_v30 = vpop.f32.mrb[50].mxu1 }
 0x26a   : > { %v2651_v39 = vpop.xlane.xlu1 %2650  ;;  %v5216_v40 = vpop.f32.mrb[43].mxu0 }
 0x26b   : > { %5795 = vpow2.f32 %v2767_v29  ;;  %v2737_v43 = vsub.f32 %v6368_v54, %v2651_v39  ;;  %v5222_v47 = vpop.f32.mrb[51].mxu1  ;;  %v3146_v40 = vsel %vm2960_vm3, %v1136_v20, 0  ;;  %v2679_v20 = vsel %vm1164_vm2, %v6422_v6, -inf }
 0x26c   : > { %v2667_v47 = vsel %vm1164_vm2, %v6404_v35, -inf }
 0x26d   : > { %v2773_v60 = vmul.f32 1.442695, %v2737_v43 }
 0x26e   : > { %v2657_v55 = vpop.xlane.xlu1 %2656  ;;  %v2648_v51 = vpop.xlane.xlu0 %2647 }
 0x26f   : > { %v6438_v53 = vpop.eup %5791  ;;  %v2736_v61 = vsub.f32 %v6378_v1, %v2648_v51  ;;  %v6441_v62 = vpop.f32.mrb[44].mxu0  ;;  %5797 = vpow2.f32 %v2773_v60  ;;  %v2739_v13 = vsub.f32 %v6376_v0, %v2657_v55  ;;  %v1137_v55 = vpack.c.bf16 %v6220_v49, %v6220_v49 }
 0x270   : > { %v6443_v63 = vpop.f32.mrb[52].mxu1  ;;  %v5227_v2 = vpop.f32.mrb[45].mxu0  ;;  %v2925_v54 = vpack.c.bf16 %v6438_v53, %v6438_v53 }
 0x271   : > { %v5233_v3 = vpop.f32.mrb[53].mxu1  ;;  %v2771_v4 = vmul.f32 1.442695, %v2736_v61  ;;  %v2036_v8 = vpop.f32.mrb[46].mxu0  ;;  %v2777_v25 = vmul.f32 1.442695, %v2739_v13 }
 0x272   : > { %v2082_v9 = vpop.f32.mrb[54].mxu1  ;;  %v5228_v11 = vpop.f32.mrb[47].mxu0  ;;  %5310 = vmatmul.mubr.msk.bf16.vlgmr.msra.gmra.mrb[72].mxu0 %vm1164_vm2, %v2925_v54  ;;  %v1138_v54 = vpack.c.bf16 %v6202_v42, %v6202_v42  ;;  %v3192_v49 = vsel %vm2960_vm3, %v1137_v55, 0  ;;  %v5654_v42 = vunpack.i.l.bf16 %v6402_v33 }
 0x273   : > { %v5234_v12 = vpop.f32.mrb[55].mxu1  ;;  %5320 = vmatpush3.bf16.msra.mxu0 %v3054_v32  ;;  %5321 = vmatprep.mubr.msk.bf16.mxu0 %vm5928_vm1, %v5927_v18  ;;  %v6451_v1 = vpop.eup %5793  ;;  %5799 = vpow2.f32 %v2771_v4 }
 0x274   : > { %5331 = vmatprep.subr.bf16.mxu0 %v5927_v18  ;;  %v2927_v29 = vpack.c.bf16 %v6451_v1, %v6451_v1 }
 0x275   : > { %v6457_v16 = vpop.eup %5795 }
 0x276   : > { %v2654_v17 = vpop.xlane.xlu0 %2653  ;;  %v2926_v19 = vpack.c.bf16 %v6457_v16, %v6457_v16 }
 0x277   : > { %v2738_v23 = vsub.f32 %v6384_v10, %v2654_v17  ;;  %v6464_v24 = vpop.f32.mrb[48].mxu0  ;;  %v6466_v0 = vpop.f32.mrb[56].mxu1  ;;  %v3238_v17 = vsel %vm2960_vm3, %v1138_v54, 0 }
 0x278   : > { %5316 = vmatmul.mubr.msk.bf16.vlgmr.msra.gmra.mrb[80].mxu1 %vm1164_vm2, %v2926_v19  ;;  %v5239_v34 = vpop.f32.mrb[49].mxu0  ;;  %v5245_v28 = vpop.f32.mrb[57].mxu1 }
 0x279   : > { %v2775_v37 = vmul.f32 1.442695, %v2738_v23  ;;  %5326 = vmatpush3.bf16.msra.mxu1 %v3100_v36  ;;  %v2128_v30 = vpop.f32.mrb[50].mxu0  ;;  %v2174_v46 = vpop.f32.mrb[58].mxu1  ;;  %5327 = vmatprep.mubr.msk.bf16.mxu1 %vm5928_vm1, %v5927_v18  ;;  %v2676_v23 = vsel %vm1164_vm2, %v6416_v59, -inf  ;;  %v1140_v28 = vpack.c.bf16 %v5654_v42, %v5654_v42 }
 0x27a   : > { %v5240_v10 = vpop.f32.mrb[51].mxu0  ;;  %v5246_v39 = vpop.f32.mrb[59].mxu1  ;;  %5322 = vmatmul.mubr.msk.bf16.vlgmr.msra.gmra.mrb[76].mxu0 %vm1164_vm2, %v2927_v29  ;;  %5337 = vmatprep.subr.bf16.mxu1 %v5927_v18 }
 0x27b   : > { %5801 = vpow2.f32 %v2775_v37  ;;  %5332 = vmatpush3.bf16.msra.mxu0 %v3146_v40  ;;  %5333 = vmatprep.mubr.msk.bf16.mxu0 %vm5928_vm1, %v5927_v18  ;;  %v6480_v43 = vpop.eup %5797 }
 0x27c   : > { %5803 = vpow2.f32 %v2777_v25  ;;  %5343 = vmatprep.subr.bf16.mxu0 %v5927_v18  ;;  %v2929_v32 = vpack.c.bf16 %v6480_v43, %v6480_v43  ;;  %v1139_v25 = vpack.c.bf16 %v6208_v45, %v6208_v45  ;;  %v5655_v45 = vunpack.i.h.bf16 %v6402_v33 }
 0x27d   : > { %v6486_v51 = vpop.eup %5799  ;;  %v3330_v33 = vsel %vm2960_vm3, %v1140_v28, 0  ;;  %v2694_v28 = vsel %vm1164_vm2, %v6443_v63, -inf }
 0x27e   : > { %v2660_v52 = vpop.xlane.xlu0 %2659  ;;  %2668 = vmax.xlane.f32.xlu1 %v2667_v47  ;;  %v2928_v3 = vpack.c.bf16 %v6486_v51, %v6486_v51  ;;  %v3284_v10 = vsel %vm2960_vm3, %v1139_v25, 0  ;;  %v2691_v47 = vsel %vm1164_vm2, %v6441_v62, -inf }
 0x27f   : > { %v2740_v60 = vsub.f32 %v6388_v15, %v2660_v52  ;;  %v6489_v61 = vpop.f32.mrb[52].mxu0  ;;  %v6491_v2 = vpop.f32.mrb[60].mxu1  ;;  %v2673_v15 = vsel %vm1164_vm2, %v6414_v58, -inf }
 0x280   : > { %v5251_v4 = vpop.f32.mrb[53].mxu0  ;;  %v5257_v8 = vpop.f32.mrb[61].mxu1  ;;  %5328 = vmatmul.mubr.msk.bf16.vlgmr.msra.gmra.mrb[84].mxu1 %vm1164_vm2, %v2928_v3 }
 0x281   : > { %v2779_v9 = vmul.f32 1.442695, %v2740_v60  ;;  %v2220_v11 = vpop.f32.mrb[54].mxu0  ;;  %v2266_v12 = vpop.f32.mrb[62].mxu1  ;;  %5338 = vmatpush3.bf16.msra.mxu1 %v3192_v49  ;;  %5339 = vmatprep.mubr.msk.bf16.mxu1 %vm5928_vm1, %v5927_v18  ;;  %v2682_v60 = vsel %vm1164_vm2, %v6424_v7, -inf  ;;  %v1141_v4 = vpack.c.bf16 %v5655_v45, %v5655_v45  ;;  %v2706_v8 = vsel %vm1164_vm2, %v6491_v2, -inf }
 0x282   : > { %v5252_v13 = vpop.f32.mrb[55].mxu0  ;;  %2674 = vmax.xlane.f32.xlu1 %v2673_v15  ;;  %v5258_v14 = vpop.f32.mrb[63].mxu1  ;;  %5334 = vmatmul.mubr.msk.bf16.vlgmr.msra.gmra.mrb[80].mxu0 %vm1164_vm2, %v2929_v32 }
 0x283   : > { %5805 = vpow2.f32 %v2779_v9  ;;  %5344 = vmatpush3.bf16.msra.mxu0 %v3238_v17  ;;  %5349 = vmatprep.subr.bf16.mxu1 %v5927_v18  ;;  %v2685_v9 = vsel %vm1164_vm2, %v6429_v26, -inf  ;;  %v3376_v13 = vsel %vm2960_vm3, %v1141_v4, 0 }
 0x284   : > { %5345 = vmatprep.mubr.msk.bf16.mxu0 %vm5928_vm1, %v5927_v18  ;;  %5355 = vmatprep.subr.bf16.mxu0 %v5927_v18 }
 0x285   : > { %v6509_v19 = vpop.eup %5801 }
 0x286   : > { %v6520_v36 = vpop.eup %5803  ;;  %2680 = vmax.xlane.f32.xlu1 %v2679_v20  ;;  %2677 = vmax.xlane.f32.xlu0 %v2676_v23  ;;  %v2930_v34 = vpack.c.bf16 %v6509_v19, %v6509_v19  ;;  %v2688_v23 = vsel %vm1164_vm2, %v6433_v27, -inf }
 0x287   : > { %v6524_v29 = vpop.f32.mrb[56].mxu0  ;;  %v6526_v37 = vpop.f32.mrb[64].mxu1  ;;  %v2931_v55 = vpack.c.bf16 %v6520_v36, %v6520_v36 }
 0x288   : > { %v5263_v30 = vpop.f32.mrb[57].mxu0  ;;  %v5269_v46 = vpop.f32.mrb[65].mxu1  ;;  %5340 = vmatmul.mubr.msk.bf16.vlgmr.msra.gmra.mrb[88].mxu1 %vm1164_vm2, %v2930_v34  ;;  %v2712_v17 = vsel %vm1164_vm2, %v6526_v37, -inf }
 0x289   : > { %v2312_v39 = vpop.f32.mrb[58].mxu0  ;;  %v2358_v40 = vpop.f32.mrb[66].mxu1  ;;  %5350 = vmatpush3.bf16.msra.mxu1 %v3284_v10  ;;  %5351 = vmatprep.mubr.msk.bf16.mxu1 %vm5928_vm1, %v5927_v18 }
 0x28a   : > { %v5264_v52 = vpop.f32.mrb[59].mxu0  ;;  %2692 = vmax.xlane.f32.xlu1 %v2691_v47  ;;  %v5270_v3 = vpop.f32.mrb[67].mxu1  ;;  %5346 = vmatmul.mubr.msk.bf16.vlgmr.msra.gmra.mrb[84].mxu0 %vm1164_vm2, %v2931_v55 }
 0x28b   : > { %2683 = vmax.xlane.f32.xlu0 %v2682_v60  ;;  %5356 = vmatpush3.bf16.msra.mxu0 %v3330_v33  ;;  %v2697_v52 = vsel %vm1164_vm2, %v6464_v24, -inf  ;;  %v2700_v3 = vsel %vm1164_vm2, %v6466_v0, -inf }
 0x28c   : > { %5361 = vmatprep.subr.bf16.mxu1 %v5927_v18  ;;  %5357 = vmatprep.mubr.msk.bf16.mxu0 %vm5928_vm1, %v5927_v18 }
 0x28d   : > { %v6541_v54 = vpop.eup %5805  ;;  %5367 = vmatprep.subr.bf16.mxu0 %v5927_v18 }
 0x28e   : > { %2707 = vmax.xlane.f32.xlu1 %v2706_v8  ;;  %v2932_v49 = vpack.c.bf16 %v6541_v54, %v6541_v54 }
 0x28f   : > { %2686 = vmax.xlane.f32.xlu0 %v2685_v9  ;;  %v6553_v11 = vpop.f32.mrb[60].mxu0  ;;  %v6555_v12 = vpop.f32.mrb[68].mxu1 }
 0x290   : > { %v5275_v15 = vpop.f32.mrb[61].mxu0  ;;  %v5281_v32 = vpop.f32.mrb[69].mxu1  ;;  %5352 = vmatmul.mubr.msk.bf16.vlgmr.msra.gmra.mrb[92].mxu1 %vm1164_vm2, %v2932_v49  ;;  %v2718_v34 = vsel %vm1164_vm2, %v6555_v12, -inf }
 0x291   : > { %v2404_v14 = vpop.f32.mrb[62].mxu0  ;;  %v2450_v42 = vpop.f32.mrb[70].mxu1  ;;  %5362 = vmatpush3.bf16.msra.mxu1 %v3376_v13  ;;  %5363 = vmatprep.mubr.msk.bf16.mxu1 %vm5928_vm1, %v5927_v18  ;;  %v2703_v13 = vsel %vm1164_vm2, %v6489_v61, -inf }
 0x292   : > { %v5276_v20 = vpop.f32.mrb[63].mxu0  ;;  %2713 = vmax.xlane.f32.xlu1 %v2712_v17  ;;  %v5282_v25 = vpop.f32.mrb[71].mxu1  ;;  %5373 = vmatprep.subr.bf16.mxu1 %v5927_v18  ;;  %v2709_v42 = vsel %vm1164_vm2, %v6524_v29, -inf  ;;  %v2715_v17 = vsel %vm1164_vm2, %v6553_v11, -inf }
 0x293   : > { %2689 = vmax.xlane.f32.xlu0 %v2688_v23 }
 0x296   : > { %2719 = vmax.xlane.f32.xlu1 %v2718_v34 }
 0x297   : > { %2695 = vmax.xlane.f32.xlu0 %v2694_v28  ;;  %v6570_v30 = vpop.f32.mrb[64].mxu0  ;;  %v6572_v46 = vpop.f32.mrb[72].mxu1 }
 0x298   : > { %v5287_v45 = vpop.f32.mrb[65].mxu0  ;;  %v5293_v10 = vpop.f32.mrb[73].mxu1  ;;  %v2724_v39 = vsel %vm1164_vm2, %v6572_v46, -inf  ;;  %v2721_v20 = vsel %vm1164_vm2, %v6570_v30, -inf }
 0x299   : > { %v2496_v40 = vpop.f32.mrb[66].mxu0  ;;  %v2542_v47 = vpop.f32.mrb[74].mxu1 }
 0x29a   : > { %v5288_v55 = vpop.f32.mrb[67].mxu0  ;;  %2725 = vmax.xlane.f32.xlu1 %v2724_v39  ;;  %v5294_v60 = vpop.f32.mrb[75].mxu1  ;;  %v5659_v47 = vunpack.i.l.bf16 %v6400_v31 }
 0x29b   : > { %2698 = vmax.xlane.f32.xlu0 %v2697_v52 }
 0x29f   : > { %2701 = vmax.xlane.f32.xlu0 %v2700_v3  ;;  %v6580_v33 = vpop.f32.mrb[68].mxu0  ;;  %v6582_v4 = vpop.f32.mrb[76].mxu1 }
 0x2a0   : > { %v5299_v8 = vpop.f32.mrb[69].mxu0  ;;  %v5305_v9 = vpop.f32.mrb[77].mxu1  ;;  %v2727_v23 = vsel %vm1164_vm2, %v6580_v33, -inf  ;;  %v2730_v25 = vsel %vm1164_vm2, %v6582_v4, -inf }
 0x2a1   : > { %v2588_v49 = vpop.f32.mrb[70].mxu0  ;;  %v2634_v15 = vpop.f32.mrb[78].mxu1 }
 0x2a2   : > { %v5300_v32 = vpop.f32.mrb[71].mxu0  ;;  %v5306_v14 = vpop.f32.mrb[79].mxu1 }
 0x2a3   : > { %2704 = vmax.xlane.f32.xlu0 %v2703_v13 }
 0x2a7   : > { %2710 = vmax.xlane.f32.xlu0 %v2709_v42 }
 0x2ab   : > { %2716 = vmax.xlane.f32.xlu0 %v2715_v17  ;;  %5687 = vrot.lane.b32.xlu1 %v6218_v48, %s5930_s30 }
 0x2af   : > { %2722 = vmax.xlane.f32.xlu0 %v2721_v20 }
 0x2b3   : > { %2728 = vmax.xlane.f32.xlu0 %v2727_v23 }
 0x2c9   : > { %5692 = vrot.lane.b32.xlu0 %v6206_v44, %s5931_s12 }
 0x2cd   : > { %5697 = vrot.lane.b32.xlu0 %v6200_v41, %s5931_s12 }
 0x2cf   : > { %2731 = vmax.xlane.f32.xlu1 %v2730_v25 }
 0x2d1   : > { %5702 = vrot.lane.b32.xlu0 %v6228_v50, %s5931_s12  ;;  %v5660_v50 = vunpack.i.h.bf16 %v6400_v31 }
 0x2d3   : > { %v1143_v60 = vpack.c.bf16 %v5660_v50, %v5660_v50 }
 0x2d5   : > { %5707 = vrot.lane.b32.xlu0 %v6218_v48, %s5931_s12  ;;  %v1142_v48 = vpack.c.bf16 %v5659_v47, %v5659_v47  ;;  %v3468_v31 = vsel %vm2960_vm3, %v1143_v60, 0 }
 0x2d6   : > { %v2663_v34 = vpop.xlane.xlu1 %2662  ;;  %v2666_v28 = vpop.xlane.xlu0 %2665 }
 0x2d7   : > { %v2741_v45 = vsub.f32 %v6392_v21, %v2663_v34  ;;  %v2742_v10 = vsub.f32 %v6394_v22, %v2666_v28  ;;  %v3422_v9 = vsel %vm2960_vm3, %v1142_v48, 0 }
 0x2d9   : > { %v2781_v44 = vmul.f32 1.442695, %v2741_v45  ;;  %v2783_v39 = vmul.f32 1.442695, %v2742_v10 }
 0x2da   : > { %v6629_v42 = vpop.permute.xlu1 %5677 }
 0x2db   : > { %5807 = vpow2.f32 %v2781_v44 }
 0x2dc   : > { %5809 = vpow2.f32 %v2783_v39 }
 0x2de   : > { %v2672_v41 = vpop.xlane.xlu0 %2671 }
 0x2df   : > { %v2744_v40 = vsub.f32 %v6406_v38, %v2672_v41  ;;  %v5675_v38 = vunpack.i.h.bf16 %v6420_v5 }
 0x2e1   : > { %v2787_v55 = vmul.f32 1.442695, %v2744_v40  ;;  %v1145_v15 = vpack.c.bf16 %v5675_v38, %v5675_v38  ;;  %v5674_v40 = vunpack.i.l.bf16 %v6420_v5 }
 0x2e2   : > { %v6632_v25 = vpop.permute.xlu0 %5682 }
 0x2e3   : > { %5811 = vpow2.f32 %v2787_v55  ;;  %v3560_v13 = vsel %vm2960_vm3, %v1145_v15, 0  ;;  %v1144_v55 = vpack.c.bf16 %v5674_v40, %v5674_v40 }
 0x2e5   : > { %v5808_v52 = vpop.eup %5807 }
 0x2e6   : > { %v5810_v3 = vpop.eup %5809  ;;  %v2933_v21 = vpack.c.bf16 %v5808_v52, %v5808_v52  ;;  %v2853_v14 = vsel %vm1164_vm2, %v5808_v52, 0.0 }
 0x2e7   : > { %v2856_v22 = vsel %vm1164_vm2, %v5810_v3, 0.0  ;;  %v2934_v8 = vpack.c.bf16 %v5810_v3, %v5810_v3 }
 0x2e8   : > { %2857 = vadd.xlane.f32.xlu1 %v2856_v22  ;;  %5358 = vmatmul.mubr.msk.bf16.vlgmr.msra.gmra.mrb[88].mxu0 %vm1164_vm2, %v2933_v21  ;;  %v3514_v22 = vsel %vm2960_vm3, %v1144_v55, 0 }
 0x2e9   : > { %5364 = vmatmul.mubr.msk.bf16.vlgmr.msra.gmra.mrb[96].mxu1 %vm1164_vm2, %v2934_v8  ;;  %5368 = vmatpush3.bf16.msra.mxu0 %v3422_v9 }
 0x2ea   : > { %5374 = vmatpush3.bf16.msra.mxu1 %v3468_v31  ;;  %5375 = vmatprep.mubr.msk.bf16.mxu1 %vm5928_vm1, %v5927_v18 }
 0x2eb   : > { %5385 = vmatprep.subr.bf16.mxu1 %v5927_v18  ;;  %5369 = vmatprep.mubr.msk.bf16.mxu0 %vm5928_vm1, %v5927_v18 }
 0x2ec   : > { %5379 = vmatprep.subr.bf16.mxu0 %v5927_v18 }
 0x2ed   : > { %v5812_v49 = vpop.eup %5811 }
 0x2ee   : > { %v2936_v32 = vpack.c.bf16 %v5812_v49, %v5812_v49  ;;  %v2862_v38 = vsel %vm1164_vm2, %v5812_v49, 0.0 }
 0x2f1   : > { %5376 = vmatmul.mubr.msk.bf16.vlgmr.msra.gmra.mrb[100].mxu1 %vm1164_vm2, %v2936_v32 }
 0x2f2   : > { %5386 = vmatpush3.bf16.msra.mxu1 %v3560_v13  ;;  %5387 = vmatprep.mubr.msk.bf16.mxu1 %vm5928_vm1, %v5927_v18 }
 0x2f3   : > { %5397 = vmatprep.subr.bf16.mxu1 %v5927_v18 }
 0x2f4   : > { %2854 = vadd.xlane.f32.xlu0 %v2853_v14 }
 0x30b   : > { %v2669_v17 = vpop.xlane.xlu1 %2668 }
 0x30c   : > { %v2743_v20 = vsub.f32 %v6404_v35, %v2669_v17 }
 0x30e   : > { %v2785_v23 = vmul.f32 1.442695, %v2743_v20 }
 0x30f   : > { %v2675_v34 = vpop.xlane.xlu1 %2674 }
 0x310   : > { %5813 = vpow2.f32 %v2785_v23  ;;  %v2745_v28 = vsub.f32 %v6414_v58, %v2675_v34 }
 0x312   : > { %v2789_v45 = vmul.f32 1.442695, %v2745_v28 }
 0x313   : > { %v2681_v10 = vpop.xlane.xlu1 %2680  ;;  %v2678_v44 = vpop.xlane.xlu0 %2677 }
 0x314   : > { %v2747_v39 = vsub.f32 %v6422_v6, %v2681_v10  ;;  %v2746_v41 = vsub.f32 %v6416_v59, %v2678_v44  ;;  %5815 = vpow2.f32 %v2789_v45  ;;  %v5664_v59 = vunpack.i.l.bf16 %v6412_v57 }
 0x315   : > { %v5669_v10 = vunpack.i.l.bf16 %v6410_v56 }
 0x316   : > { %v2793_v47 = vmul.f32 1.442695, %v2747_v39  ;;  %v2791_v50 = vmul.f32 1.442695, %v2746_v41  ;;  %v5670_v39 = vunpack.i.h.bf16 %v6410_v56 }
 0x317   : > { %v2693_v21 = vpop.xlane.xlu1 %2692  ;;  %v1148_v56 = vpack.c.bf16 %v5669_v10, %v5669_v10 }
 0x318   : > { %v2684_v35 = vpop.xlane.xlu0 %2683  ;;  %5817 = vpow2.f32 %v2791_v50  ;;  %v2751_v8 = vsub.f32 %v6441_v62, %v2693_v21 }
 0x319   : > { %v2748_v48 = vsub.f32 %v6424_v7, %v2684_v35  ;;  %5819 = vpow2.f32 %v2793_v47  ;;  %v5665_v7 = vunpack.i.h.bf16 %v6412_v57 }
 0x31a   : > { %v5814_v52 = vpop.eup %5813  ;;  %v2801_v17 = vmul.f32 1.442695, %v2751_v8 }
 0x31b   : > { %v2795_v58 = vmul.f32 1.442695, %v2748_v48  ;;  %v2859_v60 = vsel %vm1164_vm2, %v5814_v52, 0.0  ;;  %v2935_v3 = vpack.c.bf16 %v5814_v52, %v5814_v52  ;;  %v1147_v13 = vpack.c.bf16 %v5665_v7, %v5665_v7  ;;  %v2708_v57 = vpop.xlane.xlu1 %2707 }
 0x31c   : > { %v2687_v6 = vpop.xlane.xlu0 %2686  ;;  %2860 = vadd.xlane.f32.xlu1 %v2859_v60  ;;  %v1149_v52 = vpack.c.bf16 %v5670_v39, %v5670_v39  ;;  %v3698_v7 = vsel %vm2960_vm3, %v1148_v56, 0 }
 0x31d   : > { %5821 = vpow2.f32 %v2795_v58  ;;  %v2749_v5 = vsub.f32 %v6429_v26, %v2687_v6  ;;  %5370 = vmatmul.mubr.msk.bf16.vlgmr.msra.gmra.mrb[92].mxu0 %vm1164_vm2, %v2935_v3  ;;  %v1146_v26 = vpack.c.bf16 %v5664_v59, %v5664_v59  ;;  %v3652_v41 = vsel %vm2960_vm3, %v1147_v13, 0 }
 0x31e   : > { %5380 = vmatpush3.bf16.msra.mxu0 %v3514_v22  ;;  %5381 = vmatprep.mubr.msk.bf16.mxu0 %vm5928_vm1, %v5927_v18  ;;  %v5816_v31 = vpop.eup %5815  ;;  %v2756_v58 = vsub.f32 %v6491_v2, %v2708_v57  ;;  %v5679_v22 = vunpack.i.l.bf16 %v6629_v42  ;;  %v5680_v2 = vunpack.i.h.bf16 %v6629_v42 }
 0x31f   : > { %v2797_v9 = vmul.f32 1.442695, %v2749_v5  ;;  %5391 = vmatprep.subr.bf16.mxu0 %v5927_v18  ;;  %v2865_v23 = vsel %vm1164_vm2, %v5816_v31, 0.0  ;;  %v2937_v62 = vpack.c.bf16 %v5816_v31, %v5816_v31 }
 0x320   : > { %v2690_v15 = vpop.xlane.xlu0 %2689  ;;  %2863 = vadd.xlane.f32.xlu1 %v2862_v38  ;;  %v2811_v8 = vmul.f32 1.442695, %v2756_v58  ;;  %v3744_v38 = vsel %vm2960_vm3, %v1149_v52, 0  ;;  %v1150_v13 = vpack.c.bf16 %v5679_v22, %v5679_v22 }
 0x321   : > { %5823 = vpow2.f32 %v2797_v9  ;;  %v2750_v32 = vsub.f32 %v6433_v27, %v2690_v15  ;;  %v3606_v27 = vsel %vm2960_vm3, %v1146_v26, 0 }
 0x322   : > { %v5818_v14 = vpop.eup %5817 }
 0x323   : > { %v2799_v20 = vmul.f32 1.442695, %v2750_v32  ;;  %v5820_v34 = vpop.eup %5819  ;;  %v2868_v49 = vsel %vm1164_vm2, %v5818_v14, 0.0  ;;  %v2938_v45 = vpack.c.bf16 %v5818_v14, %v5818_v14 }
 0x324   : > { %v2696_v28 = vpop.xlane.xlu0 %2695  ;;  %2866 = vadd.xlane.f32.xlu1 %v2865_v23  ;;  %2869 = vadd.xlane.f32.xlu0 %v2868_v49  ;;  %v2871_v50 = vsel %vm1164_vm2, %v5820_v34, 0.0  ;;  %v2939_v21 = vpack.c.bf16 %v5820_v34, %v5820_v34 }
 0x325   : > { %5825 = vpow2.f32 %v2799_v20  ;;  %v2752_v44 = vsub.f32 %v6443_v63, %v2696_v28  ;;  %5382 = vmatmul.mubr.msk.bf16.vlgmr.msra.gmra.mrb[96].mxu0 %vm1164_vm2, %v2937_v62  ;;  %5388 = vmatmul.mubr.msk.bf16.vlgmr.msra.gmra.mrb[104].mxu1 %vm1164_vm2, %v2938_v45  ;;  %v2714_v63 = vpop.xlane.xlu1 %2713 }
 0x326   : > { %5392 = vmatpush3.bf16.msra.mxu0 %v3606_v27  ;;  %5827 = vpow2.f32 %v2801_v17  ;;  %5398 = vmatpush3.bf16.msra.mxu1 %v3652_v41  ;;  %v2758_v15 = vsub.f32 %v6526_v37, %v2714_v63  ;;  %v1151_v37 = vpack.c.bf16 %v5680_v2, %v5680_v2 }
 0x327   : > { %v5822_v40 = vpop.eup %5821  ;;  %v2803_v47 = vmul.f32 1.442695, %v2752_v44  ;;  %5393 = vmatprep.mubr.msk.bf16.mxu0 %vm5928_vm1, %v5927_v18  ;;  %5399 = vmatprep.mubr.msk.bf16.mxu1 %vm5928_vm1, %v5927_v18  ;;  %v5685_v44 = vunpack.i.h.bf16 %v6632_v25 }
 0x328   : > { %v2699_v35 = vpop.xlane.xlu0 %2698  ;;  %v2874_v55 = vsel %vm1164_vm2, %v5822_v40, 0.0  ;;  %2872 = vadd.xlane.f32.xlu1 %v2871_v50  ;;  %5403 = vmatprep.subr.bf16.mxu0 %v5927_v18  ;;  %v2940_v5 = vpack.c.bf16 %v5822_v40, %v5822_v40  ;;  %v2815_v14 = vmul.f32 1.442695, %v2758_v15  ;;  %v3836_v27 = vsel %vm2960_vm3, %v1151_v37, 0 }
 0x329   : > { %v2753_v48 = vsub.f32 %v6464_v24, %v2699_v35  ;;  %2875 = vadd.xlane.f32.xlu0 %v2874_v55  ;;  %5409 = vmatprep.subr.bf16.mxu1 %v5927_v18  ;;  %5829 = vpow2.f32 %v2803_v47  ;;  %v2720_v9 = vpop.xlane.xlu1 %2719 }
 0x32a   : > { %v2760_v17 = vsub.f32 %v6555_v12, %v2720_v9  ;;  %v5684_v12 = vunpack.i.l.bf16 %v6632_v25 }
 0x32b   : > { %v5824_v60 = vpop.eup %5823  ;;  %v2805_v3 = vmul.f32 1.442695, %v2753_v48 }
 0x32c   : > { %v2702_v6 = vpop.xlane.xlu0 %2701  ;;  %v2877_v59 = vsel %vm1164_vm2, %v5824_v60, 0.0  ;;  %v2941_v23 = vpack.c.bf16 %v5824_v60, %v5824_v60  ;;  %v2819_v39 = vmul.f32 1.442695, %v2760_v17  ;;  %v1152_v63 = vpack.c.bf16 %v5684_v12, %v5684_v12 }
 0x32d   : > { %v2754_v24 = vsub.f32 %v6466_v0, %v2702_v6  ;;  %2878 = vadd.xlane.f32.xlu1 %v2877_v59  ;;  %5394 = vmatmul.mubr.msk.bf16.vlgmr.msra.gmra.mrb[100].mxu0 %vm1164_vm2, %v2939_v21  ;;  %5831 = vpow2.f32 %v2805_v3  ;;  %v2726_v62 = vpop.xlane.xlu1 %2725 }
 0x32e   : > { %5400 = vmatmul.mubr.msk.bf16.vlgmr.msra.gmra.mrb[108].mxu1 %vm1164_vm2, %v2940_v5  ;;  %5404 = vmatpush3.bf16.msra.mxu0 %v3698_v7  ;;  %v2762_v41 = vsub.f32 %v6572_v46, %v2726_v62  ;;  %v1153_v46 = vpack.c.bf16 %v5685_v44, %v5685_v44  ;;  %v3882_v22 = vsel %vm2960_vm3, %v1152_v63, 0 }
 0x32f   : > { %v5826_v31 = vpop.eup %5825  ;;  %v2807_v26 = vmul.f32 1.442695, %v2754_v24  ;;  %5410 = vmatpush3.bf16.msra.mxu1 %v3744_v38  ;;  %5405 = vmatprep.mubr.msk.bf16.mxu0 %vm5928_vm1, %v5927_v18 }
 0x330   : > { %v2705_v0 = vpop.xlane.xlu0 %2704  ;;  %v2880_v32 = vsel %vm1164_vm2, %v5826_v31, 0.0  ;;  %5411 = vmatprep.mubr.msk.bf16.mxu1 %vm5928_vm1, %v5927_v18  ;;  %5415 = vmatprep.subr.bf16.mxu0 %v5927_v18  ;;  %v5828_v42 = vpop.eup %5827  ;;  %v2942_v49 = vpack.c.bf16 %v5826_v31, %v5826_v31  ;;  %v2823_v55 = vmul.f32 1.442695, %v2762_v41  ;;  %v3928_v24 = vsel %vm2960_vm3, %v1153_v46, 0 }
 0x331   : > { %5833 = vpow2.f32 %v2807_v26  ;;  %v2755_v57 = vsub.f32 %v6489_v61, %v2705_v0  ;;  %2881 = vadd.xlane.f32.xlu1 %v2880_v32  ;;  %5421 = vmatprep.subr.bf16.mxu1 %v5927_v18  ;;  %v2883_v28 = vsel %vm1164_vm2, %v5828_v42, 0.0  ;;  %v3790_v61 = vsel %vm2960_vm3, %v1150_v13, 0  ;;  %v5688_v56 = vpop.permute.xlu1 %5687 }
 0x332   : > { %5835 = vpow2.f32 %v2811_v8  ;;  %v2943_v21 = vpack.c.bf16 %v5828_v42, %v5828_v42  ;;  %v5690_v59 = vunpack.i.h.bf16 %v5688_v56  ;;  %v5689_v5 = vunpack.i.l.bf16 %v5688_v56 }
 0x333   : > { %v2809_v20 = vmul.f32 1.442695, %v2755_v57  ;;  %v5830_v45 = vpop.eup %5829 }
 0x334   : > { %v2711_v34 = vpop.xlane.xlu0 %2710  ;;  %v2886_v47 = vsel %vm1164_vm2, %v5830_v45, 0.0  ;;  %v2944_v6 = vpack.c.bf16 %v5830_v45, %v5830_v45  ;;  %v1155_v15 = vpack.c.bf16 %v5690_v59, %v5690_v59  ;;  %v1154_v26 = vpack.c.bf16 %v5689_v5, %v5689_v5 }
 0x335   : > { %5837 = vpow2.f32 %v2809_v20  ;;  %v2757_v10 = vsub.f32 %v6524_v29, %v2711_v34  ;;  %2884 = vadd.xlane.f32.xlu1 %v2883_v28  ;;  %5406 = vmatmul.mubr.msk.bf16.vlgmr.msra.gmra.mrb[104].mxu0 %vm1164_vm2, %v2941_v23 }
 0x336   : > { %5412 = vmatmul.mubr.msk.bf16.vlgmr.msra.gmra.mrb[112].mxu1 %vm1164_vm2, %v2942_v49  ;;  %5416 = vmatpush3.bf16.msra.mxu0 %v3790_v61  ;;  %5839 = vpow2.f32 %v2815_v14  ;;  %v3974_v62 = vsel %vm2960_vm3, %v1154_v26, 0  ;;  %v4020_v34 = vsel %vm2960_vm3, %v1155_v15, 0 }
 0x337   : > { %v2813_v40 = vmul.f32 1.442695, %v2757_v10  ;;  %5422 = vmatpush3.bf16.msra.mxu1 %v3836_v27  ;;  %5417 = vmatprep.mubr.msk.bf16.mxu0 %vm5928_vm1, %v5927_v18  ;;  %v5832_v25 = vpop.eup %5831 }
 0x338   : > { %v2717_v29 = vpop.xlane.xlu0 %2716  ;;  %5423 = vmatprep.mubr.msk.bf16.mxu1 %vm5928_vm1, %v5927_v18  ;;  %5427 = vmatprep.subr.bf16.mxu0 %v5927_v18  ;;  %v2889_v3 = vsel %vm1164_vm2, %v5832_v25, 0.0  ;;  %v2945_v37 = vpack.c.bf16 %v5832_v25, %v5832_v25 }
 0x339   : > { %5841 = vpow2.f32 %v2813_v40  ;;  %v2759_v50 = vsub.f32 %v6553_v11, %v2717_v29  ;;  %2887 = vadd.xlane.f32.xlu1 %v2886_v47  ;;  %5433 = vmatprep.subr.bf16.mxu1 %v5927_v18 }
 0x33a   : > { %5843 = vpow2.f32 %v2819_v39 }
 0x33b   : > { %v5834_v35 = vpop.eup %5833  ;;  %v2817_v48 = vmul.f32 1.442695, %v2759_v50 }
 0x33c   : > { %v6705_v52 = vpop.eup %5835  ;;  %v2723_v58 = vpop.xlane.xlu0 %2722  ;;  %v2892_v60 = vsel %vm1164_vm2, %v5834_v35, 0.0 }
 0x33d   : > { %5845 = vpow2.f32 %v2817_v48  ;;  %v2761_v11 = vsub.f32 %v6570_v30, %v2723_v58  ;;  %2893 = vadd.xlane.f32.xlu0 %v2892_v60  ;;  %2890 = vadd.xlane.f32.xlu1 %v2889_v3  ;;  %v2898_v30 = vsel %vm1164_vm2, %v6705_v52, 0.0  ;;  %v2948_v63 = vpack.c.bf16 %v6705_v52, %v6705_v52 }
 0x33e   : > { %5418 = vmatmul.mubr.msk.bf16.vlgmr.msra.gmra.mrb[108].mxu0 %vm1164_vm2, %v2943_v21  ;;  %5424 = vmatmul.mubr.msk.bf16.vlgmr.msra.gmra.mrb[116].mxu1 %vm1164_vm2, %v2944_v6  ;;  %5847 = vpow2.f32 %v2823_v55 }
 0x33f   : > { %v6714_v7 = vpop.eup %5837  ;;  %v2821_v2 = vmul.f32 1.442695, %v2761_v11  ;;  %5428 = vmatpush3.bf16.msra.mxu0 %v3882_v22  ;;  %5434 = vmatpush3.bf16.msra.mxu1 %v3928_v24 }
 0x340   : > { %v2729_v8 = vpop.xlane.xlu0 %2728  ;;  %v2895_v9 = vsel %vm1164_vm2, %v6714_v7, 0.0  ;;  %5429 = vmatprep.mubr.msk.bf16.mxu0 %vm5928_vm1, %v5927_v18  ;;  %5435 = vmatprep.mubr.msk.bf16.mxu1 %vm5928_vm1, %v5927_v18  ;;  %v6724_v38 = vpop.eup %5839  ;;  %v2947_v46 = vpack.c.bf16 %v6714_v7, %v6714_v7 }
 0x341   : > { %5849 = vpow2.f32 %v2821_v2  ;;  %v2763_v31 = vsub.f32 %v6580_v33, %v2729_v8  ;;  %2899 = vadd.xlane.f32.xlu0 %v2898_v30  ;;  %2896 = vadd.xlane.f32.xlu1 %v2895_v9  ;;  %v2904_v13 = vsel %vm1164_vm2, %v6724_v38, 0.0  ;;  %v2946_v33 = vpack.c.bf16 %v5834_v35, %v5834_v35 }
 0x342   : > { %5439 = vmatprep.subr.bf16.mxu0 %v5927_v18  ;;  %5445 = vmatprep.subr.bf16.mxu1 %v5927_v18  ;;  %v2829_v2 = vsel %vm1164_vm2, %v6438_v53, 0.0  ;;  %v2950_v30 = vpack.c.bf16 %v6724_v38, %v6724_v38 }
 0x343   : > { %v6729_v0 = vpop.eup %5841  ;;  %v2825_v32 = vmul.f32 1.442695, %v2763_v31 }
 0x344   : > { %v5693_v42 = vpop.permute.xlu0 %5692  ;;  %v2901_v57 = vsel %vm1164_vm2, %v6729_v0, 0.0  ;;  %v6735_v14 = vpop.eup %5843  ;;  %v2949_v8 = vpack.c.bf16 %v6729_v0, %v6729_v0 }
 0x345   : > { %5851 = vpow2.f32 %v2825_v32  ;;  %2905 = vadd.xlane.f32.xlu0 %v2904_v13  ;;  %2902 = vadd.xlane.f32.xlu1 %v2901_v57  ;;  %v6737_v17 = vpop.f32.mrb[72].mxu0  ;;  %v5695_v20 = vunpack.i.h.bf16 %v5693_v42  ;;  %v5694_v23 = vunpack.i.l.bf16 %v5693_v42  ;;  %v2910_v61 = vsel %vm1164_vm2, %v6735_v14, 0.0 }
 0x346   : > { %5430 = vmatmul.mubr.msk.bf16.vlgmr.msra.gmra.mrb[112].mxu0 %vm1164_vm2, %v2945_v37  ;;  %5436 = vmatmul.mubr.msk.bf16.vlgmr.msra.gmra.mrb[120].mxu1 %vm1164_vm2, %v2946_v33  ;;  %v5311_v28 = vpop.f32.mrb[73].mxu0  ;;  %v2835_v57 = vsel %vm1164_vm2, %v6451_v1, 0.0  ;;  %v2841_v1 = vsel %vm1164_vm2, %v6480_v43, 0.0 }
 0x347   : > { %v6743_v49 = vpop.eup %5845  ;;  %5440 = vmatpush3.bf16.msra.mxu0 %v3974_v62  ;;  %5446 = vmatpush3.bf16.msra.mxu1 %v4020_v34  ;;  %v3001_v45 = vpop.f32.mrb[74].mxu0  ;;  %v1157_v27 = vpack.c.bf16 %v5695_v20, %v5695_v20  ;;  %v1156_v39 = vpack.c.bf16 %v5694_v23, %v5694_v23 }
 0x348   : > { %v5312_v10 = vpop.f32.mrb[75].mxu0  ;;  %v2907_v44 = vsel %vm1164_vm2, %v6743_v49, 0.0  ;;  %5441 = vmatprep.mubr.msk.bf16.mxu0 %vm5928_vm1, %v5927_v18  ;;  %5447 = vmatprep.mubr.msk.bf16.mxu1 %vm5928_vm1, %v5927_v18  ;;  %v6753_v12 = vpop.eup %5847  ;;  %v2951_v28 = vpack.c.bf16 %v6743_v49, %v6743_v49  ;;  %v2952_v45 = vpack.c.bf16 %v6735_v14, %v6735_v14 }
 0x349   : > { %2911 = vadd.xlane.f32.xlu0 %v2910_v61  ;;  %2908 = vadd.xlane.f32.xlu1 %v2907_v44  ;;  %v5698_v40 = vpop.permute.xlu0 %5697  ;;  %v2916_v25 = vsel %vm1164_vm2, %v6753_v12, 0.0  ;;  %v4066_v60 = vsel %vm2960_vm3, %v1156_v39, 0  ;;  %v4112_v3 = vsel %vm2960_vm3, %v1157_v27, 0 }
 0x34a   : > { %5451 = vmatprep.subr.bf16.mxu0 %v5927_v18  ;;  %5457 = vmatprep.subr.bf16.mxu1 %v5927_v18  ;;  %v5700_v56 = vunpack.i.h.bf16 %v5698_v40  ;;  %v5699_v48 = vunpack.i.l.bf16 %v5698_v40 }
 0x34b   : > { %v6757_v41 = vpop.eup %5849  ;;  %v6759_v29 = vpop.f32.mrb[80].mxu1 }
 0x34c   : > { %v5317_v47 = vpop.f32.mrb[81].mxu1  ;;  %v2913_v50 = vsel %vm1164_vm2, %v6757_v41, 0.0  ;;  %v1159_v5 = vpack.c.bf16 %v5700_v56, %v5700_v56  ;;  %v1158_v22 = vpack.c.bf16 %v5699_v48, %v5699_v48  ;;  %v2954_v48 = vpack.c.bf16 %v6753_v12, %v6753_v12 }
 0x34d   : > { %2917 = vadd.xlane.f32.xlu0 %v2916_v25  ;;  %2914 = vadd.xlane.f32.xlu1 %v2913_v50  ;;  %v3047_v35 = vpop.f32.mrb[82].mxu1  ;;  %v6769_v55 = vpop.f32.mrb[76].mxu0 }
 0x34e   : > { %v5318_v58 = vpop.f32.mrb[83].mxu1  ;;  %5442 = vmatmul.mubr.msk.bf16.vlgmr.msra.gmra.mrb[116].mxu0 %vm1164_vm2, %v2947_v46  ;;  %5448 = vmatmul.mubr.msk.bf16.vlgmr.msra.gmra.mrb[124].mxu1 %vm1164_vm2, %v2948_v63  ;;  %v5323_v21 = vpop.f32.mrb[77].mxu0  ;;  %v4158_v42 = vsel %vm2960_vm3, %v1158_v22, 0  ;;  %v4204_v53 = vsel %vm2960_vm3, %v1159_v5, 0  ;;  %v2832_v5 = vsel %vm1164_vm2, %v6457_v16, 0.0  ;;  %v2838_v22 = vsel %vm1164_vm2, %v6486_v51, 0.0 }
 0x34f   : > { %v6775_v6 = vpop.eup %5851  ;;  %5452 = vmatpush3.bf16.msra.mxu0 %v4066_v60  ;;  %5458 = vmatpush3.bf16.msra.mxu1 %v4112_v3  ;;  %v3093_v52 = vpop.f32.mrb[78].mxu0 }
 0x350   : > { %v5324_v11 = vpop.f32.mrb[79].mxu0  ;;  %v2919_v59 = vsel %vm1164_vm2, %v6775_v6, 0.0  ;;  %5453 = vmatprep.mubr.msk.bf16.mxu0 %vm5928_vm1, %v5927_v18  ;;  %5459 = vmatprep.mubr.msk.bf16.mxu1 %vm5928_vm1, %v5927_v18  ;;  %v5703_v24 = vpop.permute.xlu0 %5702 }
 0x351   : > { %2920 = vadd.xlane.f32.xlu1 %v2919_v59  ;;  %5463 = vmatprep.subr.bf16.mxu0 %v5927_v18  ;;  %v5705_v31 = vunpack.i.h.bf16 %v5703_v24  ;;  %v5704_v15 = vunpack.i.l.bf16 %v5703_v24 }
 0x352   : > { %5469 = vmatprep.subr.bf16.mxu1 %v5927_v18 }
 0x353   : > { %v6785_v7 = vpop.f32.mrb[84].mxu1  ;;  %v1161_v33 = vpack.c.bf16 %v5705_v31, %v5705_v31  ;;  %v1160_v20 = vpack.c.bf16 %v5704_v15, %v5704_v15 }
 0x354   : > { %v5329_v9 = vpop.f32.mrb[85].mxu1  ;;  %v5708_v23 = vpop.permute.xlu0 %5707 }
 0x355   : > { %2830 = vadd.xlane.f32.xlu1 %v2829_v2  ;;  %v3139_v26 = vpop.f32.mrb[86].mxu1  ;;  %v6793_v32 = vpop.f32.mrb[80].mxu0  ;;  %v5710_v44 = vunpack.i.h.bf16 %v5708_v23  ;;  %v5709_v27 = vunpack.i.l.bf16 %v5708_v23  ;;  %v4250_v43 = vsel %vm2960_vm3, %v1160_v20, 0  ;;  %v4296_v49 = vsel %vm2960_vm3, %v1161_v33, 0 }
 0x356   : > { %5454 = vmatmul.mubr.msk.bf16.vlgmr.msra.gmra.mrb[120].mxu0 %vm1164_vm2, %v2949_v8  ;;  %5460 = vmatmul.mubr.msk.bf16.vlgmr.msra.gmra.mrb[128].mxu1 %vm1164_vm2, %v2950_v30  ;;  %v5330_v13 = vpop.f32.mrb[87].mxu1  ;;  %v5335_v0 = vpop.f32.mrb[81].mxu0 }
 0x357   : > { %5464 = vmatpush3.bf16.msra.mxu0 %v4158_v42  ;;  %5470 = vmatpush3.bf16.msra.mxu1 %v4204_v53  ;;  %v3185_v38 = vpop.f32.mrb[82].mxu0  ;;  %v1163_v63 = vpack.c.bf16 %v5710_v44, %v5710_v44  ;;  %v1162_v35 = vpack.c.bf16 %v5709_v27, %v5709_v27 }
 0x358   : > { %5465 = vmatprep.mubr.msk.bf16.mxu0 %vm5928_vm1, %v5927_v18  ;;  %5471 = vmatprep.mubr.msk.bf16.mxu1 %vm5928_vm1, %v5927_v18  ;;  %v5336_v37 = vpop.f32.mrb[83].mxu0 }
 0x359   : > { %2836 = vadd.xlane.f32.xlu1 %v2835_v57  ;;  %5475 = vmatprep.subr.bf16.mxu0 %v5927_v18  ;;  %v4342_v3 = vsel %vm2960_vm3, %v1162_v35, 0  ;;  %v4388_v21 = vsel %vm2960_vm3, %v1163_v63, 0 }
 0x35a   : > { %5481 = vmatprep.subr.bf16.mxu1 %v5927_v18 }
 0x35b   : > { %v6807_v62 = vpop.f32.mrb[88].mxu1 }
 0x35c   : > { %v2732_v34 = vpop.xlane.xlu1 %2731  ;;  %v5341_v10 = vpop.f32.mrb[89].mxu1 }
 0x35d   : > { %2842 = vadd.xlane.f32.xlu1 %v2841_v1  ;;  %v2764_v61 = vsub.f32 %v6582_v4, %v2732_v34  ;;  %v3231_v39 = vpop.f32.mrb[90].mxu1  ;;  %v6816_v40 = vpop.f32.mrb[84].mxu0  ;;  %v2847_v4 = vsel %vm1164_vm2, %v6520_v36, 0.0  ;;  %v2953_v36 = vpack.c.bf16 %v6757_v41, %v6757_v41  ;;  %v2955_v41 = vpack.c.bf16 %v6775_v6, %v6775_v6 }
 0x35e   : > { %5466 = vmatmul.mubr.msk.bf16.vlgmr.msra.gmra.mrb[124].mxu0 %vm1164_vm2, %v2951_v28  ;;  %5472 = vmatmul.mubr.msk.bf16.vlgmr.msra.gmra.mrb[132].mxu1 %vm1164_vm2, %v2952_v45  ;;  %v5342_v25 = vpop.f32.mrb[91].mxu1  ;;  %v5347_v14 = vpop.f32.mrb[85].mxu0  ;;  %v2850_v6 = vsel %vm1164_vm2, %v6541_v54, 0.0 }
 0x35f   : > { %v2827_v47 = vmul.f32 1.442695, %v2764_v61  ;;  %5476 = vmatpush3.bf16.msra.mxu0 %v4250_v43  ;;  %5482 = vmatpush3.bf16.msra.mxu1 %v4296_v49  ;;  %v3277_v50 = vpop.f32.mrb[86].mxu0 }
 0x360   : > { %5477 = vmatprep.mubr.msk.bf16.mxu0 %vm5928_vm1, %v5927_v18  ;;  %5483 = vmatprep.mubr.msk.bf16.mxu1 %vm5928_vm1, %v5927_v18  ;;  %v5348_v46 = vpop.f32.mrb[87].mxu0 }
 0x361   : > { %5853 = vpow2.f32 %v2827_v47  ;;  %2848 = vadd.xlane.f32.xlu1 %v2847_v4  ;;  %5487 = vmatprep.subr.bf16.mxu0 %v5927_v18 }
 0x362   : > { %5493 = vmatprep.subr.bf16.mxu1 %v5927_v18 }
 0x363   : > { %v6830_v56 = vpop.f32.mrb[92].mxu1 }
 0x364   : > { %v5353_v58 = vpop.f32.mrb[93].mxu1 }
 0x365   : > { %v3323_v60 = vpop.f32.mrb[94].mxu1 }
 0x366   : > { %5478 = vmatmul.mubr.msk.bf16.vlgmr.msra.gmra.mrb[128].mxu0 %vm1164_vm2, %v2953_v36  ;;  %5484 = vmatmul.mubr.msk.bf16.vlgmr.msra.gmra.mrb[136].mxu1 %vm1164_vm2, %v2954_v48  ;;  %v5354_v52 = vpop.f32.mrb[95].mxu1 }
 0x367   : > { %5488 = vmatpush3.bf16.msra.mxu0 %v4342_v3  ;;  %5494 = vmatpush3.bf16.msra.mxu1 %v4388_v21 }
 0x368   : > { %5489 = vmatprep.mubr.msk.bf16.mxu0 %vm5928_vm1, %v5927_v18  ;;  %5495 = vmatprep.mubr.msk.bf16.mxu1 %vm5928_vm1, %v5927_v18  ;;  %v2844_v18 = vsel %vm1164_vm2, %v6509_v19, 0.0 }
 0x36b   : > { %v5854_v12 = vpop.eup %5853 }
 0x36c   : > { %v2922_v11 = vsel %vm1164_vm2, %v5854_v12, 0.0  ;;  %v2956_v59 = vpack.c.bf16 %v5854_v12, %v5854_v12 }
 0x36d   : > { %2923 = vadd.xlane.f32.xlu0 %v2922_v11 }
 0x36e   : > { %5490 = vmatmul.mubr.msk.bf16.vlgmr.msra.gmra.mrb[132].mxu0 %vm1164_vm2, %v2955_v41  ;;  %5496 = vmatmul.mubr.msk.bf16.vlgmr.msra.gmra.mrb[140].mxu1 %vm1164_vm2, %v2956_v59 }
 0x371   : > { %2833 = vadd.xlane.f32.xlu0 %v2832_v5 }
 0x375   : > { %2839 = vadd.xlane.f32.xlu0 %v2838_v22  ;;  %v2858_v2 = vpop.xlane.xlu1 %2857 }
 0x379   : > { %2845 = vadd.xlane.f32.xlu0 %v2844_v18 }
 0x37d   : > { %2851 = vadd.xlane.f32.xlu0 %v2850_v6 }
 0x381   : > { %v2855_v24 = vpop.xlane.xlu0 %2854 }
 0x382   : > { %5855 = vrcp.f32 %v2855_v24 }
 0x383   : > { %5857 = vrcp.f32 %v2858_v2 }
 0x38c   : > { %v5856_v8 = vpop.eup %5855 }
 0x38d   : > { %v5858_v16 = vpop.eup %5857 }
 0x3a9   : > { %v2861_v33 = vpop.xlane.xlu1 %2860 }
 0x3aa   : > { %5859 = vrcp.f32 %v2861_v33 }
 0x3ad   : > { %v2864_v20 = vpop.xlane.xlu1 %2863 }
 0x3ae   : > { %5861 = vrcp.f32 %v2864_v20 }
 0x3b1   : > { %v2867_v23 = vpop.xlane.xlu1 %2866  ;;  %v2870_v34 = vpop.xlane.xlu0 %2869 }
 0x3b2   : > { %5863 = vrcp.f32 %v2867_v23 }
 0x3b3   : > { %5865 = vrcp.f32 %v2870_v34 }
 0x3b4   : > { %v5860_v45 = vpop.eup %5859 }
 0x3b5   : > { %v2873_v1 = vpop.xlane.xlu1 %2872 }
 0x3b6   : > { %v2876_v14 = vpop.xlane.xlu0 %2875  ;;  %5867 = vrcp.f32 %v2873_v1 }
 0x3b7   : > { %5869 = vrcp.f32 %v2876_v14 }
 0x3b8   : > { %v5862_v10 = vpop.eup %5861 }
 0x3ba   : > { %v2879_v28 = vpop.xlane.xlu1 %2878 }
 0x3bb   : > { %v3366_v30 = vpop.f32.mrb[88].mxu0  ;;  %5871 = vrcp.f32 %v2879_v28 }
 0x3bc   : > { %v4470_v9 = vmul.f32 %v5856_v8, %v3366_v30  ;;  %v3412_v31 = vpop.f32.mrb[96].mxu1  ;;  %v5359_v15 = vpop.f32.mrb[89].mxu0 }
 0x3bd   : > { %v4471_v51 = vmul.f32 %v5858_v16, %v3412_v31  ;;  %v5365_v26 = vpop.f32.mrb[97].mxu1  ;;  %v3369_v42 = vpop.f32.mrb[90].mxu0 }
 0x3be   : > { %v3415_v53 = vpop.f32.mrb[98].mxu1  ;;  %v5360_v13 = vpop.f32.mrb[91].mxu0 }
 0x3bf   : > { %v5711_v19 = vpack.i.bf16 %v4471_v51, %v4470_v9  ;;  %v5366_v0 = vpop.f32.mrb[99].mxu1  ;;  %v2882_v43 = vpop.xlane.xlu1 %2881 }
 0x3c0   : > { %v5864_v50 = vpop.eup %5863  ;;  %5873 = vrcp.f32 %v2882_v43 }
 0x3c1   : > { %5712 = vrot.lane.b32.xlu1 %v5711_v19, %s5932_s15  ;;  %v5866_v63 = vpop.eup %5865 }
 0x3c2   : > { %v5868_v11 = vpop.eup %5867 }
 0x3c3   : > { %v2885_v4 = vpop.xlane.xlu1 %2884  ;;  %v5870_v22 = vpop.eup %5869 }
 0x3c4   : > { %v3504_v54 = vpop.f32.mrb[100].mxu1  ;;  %5875 = vrcp.f32 %v2885_v4 }
 0x3c5   : > { %v5377_v38 = vpop.f32.mrb[101].mxu1  ;;  %v4473_v44 = vmul.f32 %v5862_v10, %v3504_v54  ;;  %v5872_v26 = vpop.eup %5871 }
 0x3c6   : > { %v3507_v57 = vpop.f32.mrb[102].mxu1 }
 0x3c7   : > { %v5378_v37 = vpop.f32.mrb[103].mxu1  ;;  %v2888_v59 = vpop.xlane.xlu1 %2887 }
 0x3c8   : > { %5877 = vrcp.f32 %v2888_v59 }
 0x3ca   : > { %v2894_v51 = vpop.xlane.xlu0 %2893  ;;  %v5874_v19 = vpop.eup %5873 }
 0x3cb   : > { %v2891_v42 = vpop.xlane.xlu1 %2890  ;;  %5879 = vrcp.f32 %v2894_v51 }
 0x3cc   : > { %5881 = vrcp.f32 %v2891_v42 }
 0x3ce   : > { %v5876_v34 = vpop.eup %5875  ;;  %v2900_v28 = vpop.xlane.xlu0 %2899 }
 0x3cf   : > { %5883 = vrcp.f32 %v2900_v28 }
 0x3d2   : > { %v5878_v10 = vpop.eup %5877 }
 0x3f0   : > { %v3458_v61 = vpop.f32.mrb[92].mxu0 }
 0x3f1   : > { %v4472_v27 = vmul.f32 %v5860_v45, %v3458_v61  ;;  %v5371_v39 = vpop.f32.mrb[93].mxu0  ;;  %v2897_v45 = vpop.xlane.xlu1 %2896 }
 0x3f2   : > { %v3461_v49 = vpop.f32.mrb[94].mxu0  ;;  %5885 = vrcp.f32 %v2897_v45 }
 0x3f3   : > { %v5716_v47 = vpack.i.bf16 %v4473_v44, %v4472_v27  ;;  %v5372_v25 = vpop.f32.mrb[95].mxu0 }
 0x3f5   : > { %5717 = vrot.lane.b32.xlu0 %v5716_v47, %s5932_s15 }
 0x3f8   : > { %v3550_v46 = vpop.f32.mrb[96].mxu0  ;;  %v3596_v36 = vpop.f32.mrb[104].mxu1 }
 0x3f9   : > { %v4474_v35 = vmul.f32 %v5864_v50, %v3550_v46  ;;  %v5383_v48 = vpop.f32.mrb[97].mxu0  ;;  %v4475_v58 = vmul.f32 %v5866_v63, %v3596_v36  ;;  %v5389_v60 = vpop.f32.mrb[105].mxu1 }
 0x3fa   : > { %v3553_v3 = vpop.f32.mrb[98].mxu0  ;;  %v3599_v21 = vpop.f32.mrb[106].mxu1 }
 0x3fb   : > { %v5721_v52 = vpack.i.bf16 %v4475_v58, %v4474_v35  ;;  %v5384_v12 = vpop.f32.mrb[99].mxu0  ;;  %v5390_v41 = vpop.f32.mrb[107].mxu1 }
 0x3fc   : > { %v5880_v46 = vpop.eup %5879  ;;  %v2906_v63 = vpop.xlane.xlu0 %2905 }
 0x3fd   : > { %5722 = vrot.lane.b32.xlu0 %v5721_v52, %s5932_s15  ;;  %v2903_v35 = vpop.xlane.xlu1 %2902  ;;  %v5882_v36 = vpop.eup %5881  ;;  %5887 = vrcp.f32 %v2906_v63 }
 0x3fe   : > { %5889 = vrcp.f32 %v2903_v35 }
 0x400   : > { %v3642_v5 = vpop.f32.mrb[100].mxu0 }
 0x401   : > { %v4476_v18 = vmul.f32 %v5868_v11, %v3642_v5  ;;  %v3688_v6 = vpop.f32.mrb[108].mxu1  ;;  %v5395_v24 = vpop.f32.mrb[101].mxu0 }
 0x402   : > { %v4477_v2 = vmul.f32 %v5870_v22, %v3688_v6  ;;  %v5401_v8 = vpop.f32.mrb[109].mxu1  ;;  %v3645_v30 = vpop.f32.mrb[102].mxu0 }
 0x403   : > { %v3691_v16 = vpop.f32.mrb[110].mxu1  ;;  %v5396_v31 = vpop.f32.mrb[103].mxu0 }
 0x404   : > { %v5726_v9 = vpack.i.bf16 %v4477_v2, %v4476_v18  ;;  %v5402_v15 = vpop.f32.mrb[111].mxu1  ;;  %v5884_v22 = vpop.eup %5883 }
 0x405   : > { %v2912_v18 = vpop.xlane.xlu0 %2911  ;;  %v2909_v6 = vpop.xlane.xlu1 %2908 }
 0x406   : > { %5727 = vrot.lane.b32.xlu1 %v5726_v9, %s5932_s15  ;;  %v5886_v24 = vpop.eup %5885  ;;  %5891 = vrcp.f32 %v2912_v18 }
 0x407   : > { %5893 = vrcp.f32 %v2909_v6 }
 0x408   : > { %v3734_v53 = vpop.f32.mrb[104].mxu0 }
 0x409   : > { %v4478_v13 = vmul.f32 %v5872_v26, %v3734_v53  ;;  %v3780_v0 = vpop.f32.mrb[112].mxu1  ;;  %v5407_v54 = vpop.f32.mrb[105].mxu0 }
 0x40a   : > { %v4479_v38 = vmul.f32 %v5874_v19, %v3780_v0  ;;  %v5413_v57 = vpop.f32.mrb[113].mxu1  ;;  %v3737_v37 = vpop.f32.mrb[106].mxu0  ;;  %v5789_v19 = vld [vmem:[%s6942_s9] sm:$0xff]  }
 0x40b   : > { %v3783_v33 = vpop.f32.mrb[114].mxu1  ;;  %v5408_v23 = vpop.f32.mrb[107].mxu0  ;;  %5499 = vmatprep.subr.bf16.mxu0 %v5789_v19 }
 0x40c   : > { %v5731_v20 = vpack.i.bf16 %v4479_v38, %v4478_v13  ;;  %v5414_v1 = vpop.f32.mrb[115].mxu1  ;;  %v5888_v13 = vpop.eup %5887  ;;  %5500 = vmatpush3.bf16.msra.mxu0 %v5789_v19 }
 0x40d   : > { %v2918_v0 = vpop.xlane.xlu0 %2917  ;;  %v2915_v54 = vpop.xlane.xlu1 %2914 }
 0x40e   : > { %5732 = vrot.lane.b32.xlu1 %v5731_v20, %s5933_s16  ;;  %v5890_v38 = vpop.eup %5889  ;;  %5895 = vrcp.f32 %v2918_v0 }
 0x40f   : > { %5897 = vrcp.f32 %v2915_v54 }
 0x411   : > { %v3826_v61 = vpop.f32.mrb[108].mxu0  ;;  %v3872_v44 = vpop.f32.mrb[116].mxu1 }
 0x412   : > { %v4480_v27 = vmul.f32 %v5876_v34, %v3826_v61  ;;  %v4481_v39 = vmul.f32 %v5878_v10, %v3872_v44  ;;  %v5419_v43 = vpop.f32.mrb[109].mxu0  ;;  %v5425_v49 = vpop.f32.mrb[117].mxu1  ;;  %v5790_v44 = vld [vmem:[%s6942_s9 + $0x8] sm:$0xff]  }
 0x413   : > { %v3829_v47 = vpop.f32.mrb[110].mxu0  ;;  %v3875_v25 = vpop.f32.mrb[118].mxu1  ;;  %5501 = vmatprep.subr.bf16.mxu0 %v5790_v44 }
 0x414   : > { %v5736_v14 = vpack.i.bf16 %v4481_v39, %v4480_v27  ;;  %v5420_v50 = vpop.f32.mrb[111].mxu0  ;;  %v5426_v4 = vpop.f32.mrb[119].mxu1  ;;  %5502 = vmatpush3.bf16.msra.mxu0 %v5790_v44 }
 0x415   : > { %v5892_v27 = vpop.eup %5891  ;;  %v2921_v39 = vpop.xlane.xlu1 %2920 }
 0x416   : > { %5737 = vrot.lane.b32.xlu1 %v5736_v14, %s5933_s16  ;;  %v5894_v43 = vpop.eup %5893  ;;  %5899 = vrcp.f32 %v2921_v39 }
 0x419   : > { %v3918_v48 = vpop.f32.mrb[112].mxu0  ;;  %v3964_v58 = vpop.f32.mrb[120].mxu1 }
 0x41a   : > { %v4482_v60 = vmul.f32 %v5882_v36, %v3918_v48  ;;  %v4483_v3 = vmul.f32 %v5880_v46, %v3964_v58  ;;  %v5431_v21 = vpop.f32.mrb[113].mxu0  ;;  %v5437_v52 = vpop.f32.mrb[121].mxu1 }
 0x41b   : > { %v3921_v12 = vpop.f32.mrb[114].mxu0  ;;  %v3967_v41 = vpop.f32.mrb[122].mxu1 }
 0x41c   : > { %v5746_v11 = vpack.i.bf16 %v4483_v3, %v4482_v60  ;;  %v5432_v59 = vpop.f32.mrb[115].mxu0  ;;  %v5438_v5 = vpop.f32.mrb[123].mxu1 }
 0x41d   : > { %v2924_v46 = vpop.xlane.xlu0 %2923  ;;  %v5896_v60 = vpop.eup %5895 }
 0x41e   : > { %5901 = vrcp.f32 %v2924_v46  ;;  %v5898_v3 = vpop.eup %5897  ;;  %v2831_v0 = vpop.xlane.xlu1 %2830 }
 0x41f   : > { %5903 = vrcp.f32 %v2831_v0 }
 0x421   : > { %v4010_v2 = vpop.f32.mrb[116].mxu0  ;;  %v4056_v8 = vpop.f32.mrb[124].mxu1 }
 0x422   : > { %v4484_v30 = vmul.f32 %v5886_v24, %v4010_v2  ;;  %v4485_v16 = vmul.f32 %v5884_v22, %v4056_v8  ;;  %v5443_v9 = vpop.f32.mrb[117].mxu0  ;;  %v5449_v31 = vpop.f32.mrb[125].mxu1 }
 0x423   : > { %v4013_v15 = vpop.f32.mrb[118].mxu0  ;;  %v4059_v51 = vpop.f32.mrb[126].mxu1 }
 0x424   : > { %v5756_v26 = vpack.i.bf16 %v4485_v16, %v4484_v30  ;;  %v5444_v42 = vpop.f32.mrb[119].mxu0  ;;  %v5450_v53 = vpop.f32.mrb[127].mxu1 }
 0x425   : > { %v5900_v2 = vpop.eup %5899  ;;  %v2834_v54 = vpop.xlane.xlu0 %2833 }
 0x426   : > { %5905 = vrcp.f32 %v2834_v54 }
 0x428   : > { %v5902_v8 = vpop.eup %5901 }
 0x429   : > { %v4102_v57 = vpop.f32.mrb[120].mxu0  ;;  %v4148_v37 = vpop.f32.mrb[128].mxu1 }
 0x42a   : > { %v4486_v33 = vmul.f32 %v5890_v38, %v4102_v57  ;;  %v4487_v20 = vmul.f32 %v5888_v13, %v4148_v37  ;;  %v5455_v23 = vpop.f32.mrb[121].mxu0  ;;  %v5461_v1 = vpop.f32.mrb[129].mxu1 }
 0x42b   : > { %v4105_v34 = vpop.f32.mrb[122].mxu0  ;;  %v4151_v28 = vpop.f32.mrb[130].mxu1 }
 0x42c   : > { %v5741_v45 = vpack.i.bf16 %v4487_v20, %v4486_v33  ;;  %v5456_v10 = vpop.f32.mrb[123].mxu0  ;;  %v5462_v61 = vpop.f32.mrb[131].mxu1 }
 0x42d   : > { %v2837_v38 = vpop.xlane.xlu1 %2836  ;;  %v2840_v57 = vpop.xlane.xlu0 %2839 }
 0x42e   : > { %5742 = vrot.lane.b32.xlu0 %v5741_v45, %s5934_s23  ;;  %5907 = vrcp.f32 %v2837_v38  ;;  %v5904_v45 = vpop.eup %5903 }
 0x42f   : > { %5909 = vrcp.f32 %v2840_v57 }
 0x430   : > { %v5906_v61 = vpop.eup %5905 }
 0x431   : > { %v4194_v49 = vpop.f32.mrb[124].mxu0  ;;  %v4240_v47 = vpop.f32.mrb[132].mxu1 }
 0x432   : > { %v4488_v25 = vmul.f32 %v5894_v43, %v4194_v49  ;;  %v4489_v14 = vmul.f32 %v5892_v27, %v4240_v47  ;;  %v5467_v50 = vpop.f32.mrb[125].mxu0  ;;  %5747 = vrot.lane.b32.xlu0 %v5746_v11, %s5933_s16  ;;  %v5473_v4 = vpop.f32.mrb[133].mxu1  ;;  %v4462_v47 = vmul.f32 %v5904_v45, %v6737_v17 }
 0x433   : > { %v4197_v63 = vpop.f32.mrb[126].mxu0  ;;  %v4243_v36 = vpop.f32.mrb[134].mxu1 }
 0x434   : > { %v5751_v35 = vpack.i.bf16 %v4489_v14, %v4488_v25  ;;  %v5468_v48 = vpop.f32.mrb[127].mxu0  ;;  %v5474_v58 = vpop.f32.mrb[135].mxu1  ;;  %v4463_v25 = vmul.f32 %v5906_v61, %v6759_v29 }
 0x435   : > { %v2843_v37 = vpop.xlane.xlu1 %2842  ;;  %v2846_v33 = vpop.xlane.xlu0 %2845 }
 0x436   : > { %5752 = vrot.lane.b32.xlu1 %v5751_v35, %s5934_s23  ;;  %5911 = vrcp.f32 %v2843_v37 }
 0x437   : > { %5913 = vrcp.f32 %v2846_v33 }
 0x438   : > { %v5908_v48 = vpop.eup %5907 }
 0x439   : > { %v4286_v21 = vpop.f32.mrb[128].mxu0  ;;  %v4332_v52 = vpop.f32.mrb[136].mxu1 }
 0x43a   : > { %v4490_v12 = vmul.f32 %v5898_v3, %v4286_v21  ;;  %v4491_v41 = vmul.f32 %v5896_v60, %v4332_v52  ;;  %v5479_v59 = vpop.f32.mrb[129].mxu0  ;;  %5757 = vrot.lane.b32.xlu1 %v5756_v26, %s5933_s16  ;;  %v5485_v11 = vpop.f32.mrb[137].mxu1 }
 0x43b   : > { %v4289_v5 = vpop.f32.mrb[130].mxu0  ;;  %v4335_v22 = vpop.f32.mrb[138].mxu1  ;;  %v4464_v59 = vmul.f32 %v5908_v48, %v6769_v55 }
 0x43c   : > { %v5761_v18 = vpack.i.bf16 %v4491_v41, %v4490_v12  ;;  %v5480_v6 = vpop.f32.mrb[131].mxu0  ;;  %v5486_v24 = vpop.f32.mrb[139].mxu1 }
 0x43d   : > { %v2849_v20 = vpop.xlane.xlu1 %2848  ;;  %v2852_v1 = vpop.xlane.xlu0 %2851 }
 0x43e   : > { %5762 = vrot.lane.b32.xlu0 %v5761_v18, %s5934_s23  ;;  %v5910_v60 = vpop.eup %5909  ;;  %5915 = vrcp.f32 %v2849_v20 }
 0x43f   : > { %v4465_v11 = vmul.f32 %v5910_v60, %v6785_v7  ;;  %5917 = vrcp.f32 %v2852_v1 }
 0x441   : > { %v4378_v30 = vpop.f32.mrb[132].mxu0  ;;  %v4424_v16 = vpop.f32.mrb[140].mxu1 }
 0x442   : > { %v4492_v9 = vmul.f32 %v5900_v2, %v4378_v30  ;;  %v5491_v31 = vpop.f32.mrb[133].mxu0  ;;  %v4493_v15 = vmul.f32 %v5902_v8, %v4424_v16  ;;  %v5497_v51 = vpop.f32.mrb[141].mxu1 }
 0x443   : > { %v4381_v42 = vpop.f32.mrb[134].mxu0  ;;  %v4427_v53 = vpop.f32.mrb[142].mxu1 }
 0x444   : > { %v5766_v19 = vpack.i.bf16 %v4493_v15, %v4492_v9  ;;  %v5492_v26 = vpop.f32.mrb[135].mxu0  ;;  %v5498_v13 = vpop.f32.mrb[143].mxu1 }
 0x445   : > { %v5713_v23 = vpop.permute.xlu1 %5712  ;;  %v5912_v2 = vpop.eup %5911 }
 0x446   : > { %5767 = vrot.lane.b32.xlu1 %v5766_v19, %s5934_s23  ;;  %v5715_v27 = vunpack.i.h.bf16 %v5713_v23  ;;  %v5714_v39 = vunpack.i.l.bf16 %v5713_v23  ;;  %v5914_v7 = vpop.eup %5913  ;;  %v4466_v19 = vmul.f32 %v5912_v2, %v6793_v32 }
 0x447   : > { %v4467_v26 = vmul.f32 %v5914_v7, %v6807_v62 }
 0x448   : > { %v4591_v50 = vsel %vm1164_vm2, %v4463_v25, %v5715_v27  ;;  %v4590_v4 = vsel %vm1164_vm2, %v4462_v47, %v5714_v39  ;;  %v5916_v37 = vpop.eup %5915 }
 0x449   : > { %v5918_v32 = vpop.eup %5917  ;;  %v4468_v27 = vmul.f32 %v5916_v37, %v6816_v40  ;;  %v4918_v40 = vld [vmem:[%s6943_s10] ss:$0 sm:$0xff] }
 0x44a   : > { %v4469_v39 = vmul.f32 %v5918_v32, %v6830_v56 }
 0x467   : > { %v5718_v28 = vpop.permute.xlu0 %5717 }
 0x468   : > { %v5720_v21 = vunpack.i.h.bf16 %v5718_v28  ;;  %v5719_v52 = vunpack.i.l.bf16 %v5718_v28 }
 0x46a   : > { %v4593_v22 = vsel %vm1164_vm2, %v4465_v11, %v5720_v21  ;;  %v4592_v18 = vsel %vm1164_vm2, %v4464_v59, %v5719_v52 }
 0x46f   : > { %v5723_v44 = vpop.permute.xlu0 %5722 }
 0x470   : > { %v5725_v15 = vunpack.i.h.bf16 %v5723_v44  ;;  %v5724_v51 = vunpack.i.l.bf16 %v5723_v44 }
 0x472   : > { %v4595_v0 = vsel %vm1164_vm2, %v4467_v26, %v5725_v15  ;;  %v4594_v54 = vsel %vm1164_vm2, %v4466_v19, %v5724_v51 }
 0x478   : > { %v6875_v34 = vpop.permute.xlu1 %5727 }
 0x479   : > { %v5730_v62 = vunpack.i.h.bf16 %v6875_v34 }
 0x480   : > { %v5733_v10 = vpop.permute.xlu1 %5732 }
 0x481   : > { %v5735_v43 = vunpack.i.h.bf16 %v5733_v10  ;;  %v5734_v49 = vunpack.i.l.bf16 %v5733_v10  ;;  %v5729_v10 = vunpack.i.l.bf16 %v6875_v34 }
 0x483   : > { %v4600_v35 = vsel %vm4598_vm4, %v4591_v50, %v5735_v43  ;;  %v4599_v36 = vsel %vm4598_vm4, %v4590_v4, %v5734_v49  ;;  %v4597_v49 = vsel %vm1164_vm2, %v4469_v39, %v5730_v62  ;;  %v4596_v47 = vsel %vm1164_vm2, %v4468_v27, %v5729_v10 }
 0x488   : > { %v5738_v58 = vpop.permute.xlu1 %5737 }
 0x489   : > { %v5740_v12 = vunpack.i.h.bf16 %v5738_v58  ;;  %v5739_v41 = vunpack.i.l.bf16 %v5738_v58 }
 0x48b   : > { %v4602_v8 = vsel %vm4598_vm4, %v4593_v22, %v5740_v12  ;;  %v4601_v30 = vsel %vm4598_vm4, %v4592_v18, %v5739_v41 }
 0x4a0   : > { %v5743_v14 = vpop.permute.xlu0 %5742 }
 0x4a1   : > { %v5745_v46 = vunpack.i.h.bf16 %v5743_v14  ;;  %v5744_v63 = vunpack.i.l.bf16 %v5743_v14 }
 0x4a3   : > { %v4609_v17 = vsel %vm4607_vm5, %v4600_v35, %v5745_v46  ;;  %v4608_v29 = vsel %vm4607_vm5, %v4599_v36, %v5744_v63 }
 0x4a4   : > { %v4616_v3 = vpack.c.bf16 %v4609_v17, %v4608_v29  ;;  %v5748_v16 = vpop.permute.xlu0 %5747 }
 0x4a5   : > { %v5750_v42 = vunpack.i.h.bf16 %v5748_v16  ;;  %v5749_v53 = vunpack.i.l.bf16 %v5748_v16 }
 0x4a6   : > { %5503 = vmatprep.mubr.msk.bf16.mxu0 %vm486_vm0, %v4616_v3 }
 0x4a7   : > { %v4604_v33 = vsel %vm4598_vm4, %v4595_v0, %v5750_v42  ;;  %v4603_v20 = vsel %vm4598_vm4, %v4594_v54, %v5749_v53 }
 0x4a8   : > { %v5753_v5 = vpop.permute.xlu1 %5752 }
 0x4a9   : > { %v5755_v6 = vunpack.i.h.bf16 %v5753_v5  ;;  %v5754_v24 = vunpack.i.l.bf16 %v5753_v5 }
 0x4ab   : > { %v4611_v9 = vsel %vm4607_vm5, %v4602_v8, %v5755_v6  ;;  %v4610_v55 = vsel %vm4607_vm5, %v4601_v30, %v5754_v24 }
 0x4ac   : > { %v4617_v31 = vpack.c.bf16 %v4611_v9, %v4610_v55  ;;  %v5758_v23 = vpop.permute.xlu1 %5757 }
 0x4ad   : > { %v5760_v61 = vunpack.i.h.bf16 %v5758_v23  ;;  %v5759_v44 = vunpack.i.l.bf16 %v5758_v23 }
 0x4ae   : > { %5504 = vmatmul.mubr.msk.bf16.vlgmr.msra.gmra.mrb[136].mxu0 %vm486_vm0, %v4617_v31 }
 0x4af   : > { %v4606_v50 = vsel %vm4598_vm4, %v4597_v49, %v5760_v61  ;;  %v4605_v34 = vsel %vm4598_vm4, %v4596_v47, %v5759_v44 }
 0x4b0   : > { %v5763_v13 = vpop.permute.xlu0 %5762 }
 0x4b1   : > { %v5765_v38 = vunpack.i.h.bf16 %v5763_v13  ;;  %v5764_v57 = vunpack.i.l.bf16 %v5763_v13 }
 0x4b3   : > { %v4613_v1 = vsel %vm4607_vm5, %v4604_v33, %v5765_v38  ;;  %v4612_v28 = vsel %vm4607_vm5, %v4603_v20, %v5764_v57 }
 0x4b4   : > { %v4618_v45 = vpack.c.bf16 %v4613_v1, %v4612_v28 }
 0x4b6   : > { %5507 = vmatprep.mubr.msk.bf16.mxu0 %vm486_vm0, %v4618_v45 }
 0x4b8   : > { %v5768_v43 = vpop.permute.xlu1 %5767 }
 0x4b9   : > { %v5770_v25 = vunpack.i.h.bf16 %v5768_v43  ;;  %v5769_v14 = vunpack.i.l.bf16 %v5768_v43 }
 0x4bb   : > { %v4615_v4 = vsel %vm4607_vm5, %v4606_v50, %v5770_v25  ;;  %v4614_v46 = vsel %vm4607_vm5, %v4605_v34, %v5769_v14 }
 0x4bc   : > { %v4619_v63 = vpack.c.bf16 %v4615_v4, %v4614_v46 }
 0x4be   : > { %5508 = vmatmul.mubr.msk.bf16.gmra.mrb[140].mxu0 %vm486_vm0, %v4619_v63 }
 0x581   : > { %v5505_v56 = vpop.f32.mrb[136].mxu0 }
 0x582   : > { %v4698_v35 = vadd.f32 %v5505_v56, %v4918_v40  ;;  %v4689_v36 = vpop.f32.mrb[137].mxu0 }
 0x583   : > { %v4690_v48 = vadd.f32 %v4918_v40, %v4689_v36  ;;  %v5506_v58 = vpop.f32.mrb[138].mxu0 }
 0x584   : > { %4722 = vst.msk [vmem:[%s432_s29 + $0x10] sm:$0xff] %vm486_vm0, %v4698_v35  ;;  %v4701_v17 = vadd.f32 %v5506_v58, %v4918_v40  ;;  %v4692_v29 = vpop.f32.mrb[139].mxu0 }
 0x585   : > { %4720 = vst.msk [vmem:[%s432_s29] sm:$0xff] %vm486_vm0, %v4690_v48  ;;  %v4693_v60 = vadd.f32 %v4918_v40, %v4692_v29 }
 0x586   : > { %4723 = vst.msk [vmem:[%s432_s29 + $0x18] sm:$0xff] %vm486_vm0, %v4701_v17 }
 0x587   : > { %4721 = vst.msk [vmem:[%s432_s29 + $0x8] sm:$0xff] %vm486_vm0, %v4693_v60 }
 0x591   : > { %v5509_v3 = vpop.f32.mrb[140].mxu0 }
 0x592   : > { %v4714_v21 = vadd.f32 %v5509_v3, %v4918_v40  ;;  %v4705_v52 = vpop.f32.mrb[141].mxu0 }
 0x593   : > { %v4706_v12 = vadd.f32 %v4918_v40, %v4705_v52  ;;  %v5510_v41 = vpop.f32.mrb[142].mxu0 }
 0x594   : > { %4726 = vst.msk [vmem:[%s432_s29 + $0x30] sm:$0xff] %vm486_vm0, %v4714_v21  ;;  %v4717_v59 = vadd.f32 %v5510_v41, %v4918_v40  ;;  %v4708_v11 = vpop.f32.mrb[143].mxu0 }
 0x595   : > { %4724 = vst.msk [vmem:[%s432_s29 + $0x20] sm:$0xff] %vm486_vm0, %v4706_v12  ;;  %v4709_v5 = vadd.f32 %v4918_v40, %v4708_v11 }
 0x596   : > { %4727 = vst.msk [vmem:[%s432_s29 + $0x38] sm:$0xff] %vm486_vm0, %v4717_v59 }
 0x597   : > { %4725 = vst.msk [vmem:[%s432_s29 + $0x28] sm:$0xff] %vm486_vm0, %v4709_v5 }
 0x598 PF: > { %s21_s17 = sadd.s32 1, %s5925_s17  }
 0x599   : > { %p18_p4 = scmp.ge.s32.totalorder %s21_s17, 4  }
 0x59b   :  { %20 = sbr.rel (!%p18_p4) target bundleno = 1 (0x1), region = 100 }

</bundles_post_ra>
